<compile_context>
chip_gen: v7x
topology: tpu7x:2x2x1
jax: 0.10.0
libtpu: 0.0.40
codegen_flags: <defaults>
</compile_context>

<pallas_src>
import jax
import jax.numpy as jnp
from jax.experimental import pallas as pl
from jax.experimental.pallas import tpu as pltpu

# Small synthetic config (module: n_fea_in=4 => 3 image channels + 1 mean channel)
H = W = 16
P = H * W            # flattened per-image spatial size -> lane axis (256 = 2 lane groups)
N_IMG = 3            # image channels
N_IN = 4             # conv1 input channels (img + mean)
N_MID = 16           # n_fea_middle
N_OUT = 3            # n_fea_out
N_OUT_PAD = 8        # conv2 output rows padded to a full sublane group
K = 5                # depthwise kernel size
PAD = 2              # depthwise padding
OFF = 128            # lane-aligned halo width in the depthwise scratch (>= PAD*W + PAD = 34)


def _make_kernel(block_b):
    S = block_b * P
    PADDED = OFF + S + OFF

    def kernel(img_ref, w1_ref, b1_ref, planes_ref, bdw_ref, w2_ref, b2_ref,
               fea_ref, map_ref, pad_ref):
        # ---- conv1 (1x1, bias); mean channel folded into w1 on the host ------------------
        # One wide MXU push for all images in this grid step: (N_MID, 3) @ (3, S).
        # Per-image blocks are lane-group aligned (P = 256), so the concat is free layout.
        x_all = jnp.concatenate([img_ref[b] for b in range(block_b)], axis=1)   # (3, S)
        x1 = jnp.dot(w1_ref[...], x_all,
                     preferred_element_type=jnp.float32) + b1_ref[...]          # (N_MID, S)

        # ---- depthwise 5x5, padding=2, bias -----------------------------------------------
        # Zero only the two halo strips; the interior is fully overwritten every step, so
        # this stays correct under a "parallel" grid (per-core scratch) too.
        pad_ref[:, 0:OFF] = jnp.zeros((N_MID, OFF), jnp.float32)
        pad_ref[:, OFF + S:PADDED] = jnp.zeros((N_MID, OFF), jnp.float32)
        pad_ref[:, OFF:OFF + S] = x1            # lane-aligned interior store (OFF = 128)

        # Taps: static lane-offset slices of the scratch ref (load path), multiplied by
        # host-precomputed weight planes that already contain the validity masks.
        # One partial accumulator per kernel row breaks the 25-deep add chain.
        row_acc = []
        for dy in range(K):
            acc = None
            for dx in range(K):
                t = dy * K + dx
                shift = (dy - PAD) * W + (dx - PAD)
                tap = pad_ref[:, OFF + shift:OFF + shift + S]    # (N_MID, S)
                term = tap * planes_ref[t]                       # masked weight plane
                acc = term if acc is None else acc + term
            row_acc.append(acc)
        fea = ((row_acc[0] + row_acc[1]) + (row_acc[2] + row_acc[3])) + row_acc[4]
        fea = fea + bdw_ref[...]                                 # (N_MID, S)

        # ---- conv2 (1x1, bias), output padded to 8 sublanes (host-padded weights) ----------
        imap = jnp.dot(w2_ref[...], fea,
                       preferred_element_type=jnp.float32) + b2_ref[...]        # (8, S)

        # Lane-group-aligned per-image stores (P is a multiple of 128 -> unmasked stores).
        for b in range(block_b):
            fea_ref[b] = fea[:, b * P:(b + 1) * P]
            map_ref[b] = imap[:, b * P:(b + 1) * P]

    return kernel


def _choose_block_b(batch):
    """Images per grid step: >= 2 steps when possible (v7x has 2 TensorCores; the extra
    ~0.35us step is noise on v5e/v6e), batched 1x1 matmuls within a step, and the block is
    capped so the per-step VMEM footprint stays bounded at large batch."""
    if batch <= 1:
        return 1
    bb = min(16, max(1, batch // 2))
    while batch % bb:          # keep the grid exact (no ragged last block)
        bb -= 1
    return bb


def _prepare_params(params, block_b):
    """Host-side weight prep — keeps the kernel body purely the hot path."""
    w1, b1, dw, bdw, w2, b2 = params
    s = block_b * P

    # Fold the linear mean channel into conv1:
    #   W1[:, :3] @ x + W1[:, 3:] * mean(x)  ==  (W1[:, :3] + W1[:, 3:] / 3) @ x
    w1_eff = (w1[:, :N_IMG] + w1[:, N_IMG:N_IN] / N_IMG).astype(jnp.float32)    # (N_MID, 3)

    # Pre-broadcast depthwise tap weights to (K*K, N_MID, S) planes with the spatial validity
    # masks folded in (covers horizontal row-wrap and, for multi-image blocks, vertical
    # cross-image wrap; the in-kernel zero halo covers out-of-buffer reads).
    lane = jnp.arange(s)
    w_pos = lane % W
    h_pos = (lane // W) % H
    planes = []
    for dy in range(K):
        for dx in range(K):
            hv = (h_pos + (dy - PAD) >= 0) & (h_pos + (dy - PAD) < H)
            wv = (w_pos + (dx - PAD) >= 0) & (w_pos + (dx - PAD) < W)
            mask = (hv & wv).astype(jnp.float32)                                # (S,)
            planes.append(dw[:, dy * K + dx][:, None] * mask[None, :])          # (N_MID, S)
    dw_planes = jnp.stack(planes, axis=0).astype(jnp.float32)                   # (K*K, N_MID, S)

    # Pad conv2 to 8 output sublanes -> unmasked (8,128)-tile stores for the map output.
    w2p = jnp.zeros((N_OUT_PAD, N_MID), jnp.float32).at[:N_OUT].set(w2)
    b2p = jnp.zeros((N_OUT_PAD, 1), jnp.float32).at[:N_OUT].set(b2)

    return (w1_eff, b1.astype(jnp.float32), dw_planes, bdw.astype(jnp.float32), w2p, b2p)


def illumination_estimator(img_nchw, params):
    """img_nchw: (B, 3, H, W) float32.  Returns (illu_fea, illu_map) in NCHW like PyTorch."""
    batch = img_nchw.shape[0]
    block_b = _choose_block_b(batch)
    nb = batch // block_b
    s = block_b * P

    # NCHW -> (B, C, H*W) is a free row-major reshape (no transpose).
    img = img_nchw.reshape(batch, N_IMG, P).astype(jnp.float32)
    w1_eff, b1, dw_planes, bdw, w2p, b2p = _prepare_params(params, block_b)

    fea, imap = pl.pallas_call(
        _make_kernel(block_b),
        out_shape=(jax.ShapeDtypeStruct((batch, N_MID, P), jnp.float32),
                   jax.ShapeDtypeStruct((batch, N_OUT_PAD, P), jnp.float32)),
        grid_spec=pltpu.PrefetchScalarGridSpec(
            num_scalar_prefetch=0,
            grid=(nb,),
            in_specs=[
                pl.BlockSpec((block_b, N_IMG, P), lambda i: (i, 0, 0)),        # images
                pl.BlockSpec((N_MID, N_IMG), lambda i: (0, 0)),                # folded conv1 w
                pl.BlockSpec((N_MID, 1), lambda i: (0, 0)),                    # conv1 bias
                pl.BlockSpec((K * K, N_MID, s), lambda i: (0, 0, 0)),          # masked dw planes
                pl.BlockSpec((N_MID, 1), lambda i: (0, 0)),                    # depthwise bias
                pl.BlockSpec((N_OUT_PAD, N_MID), lambda i: (0, 0)),            # conv2 w (padded)
                pl.BlockSpec((N_OUT_PAD, 1), lambda i: (0, 0)),                # conv2 bias
            ],
            out_specs=[
                pl.BlockSpec((block_b, N_MID, P), lambda i: (i, 0, 0)),        # illu_fea
                pl.BlockSpec((block_b, N_OUT_PAD, P), lambda i: (i, 0, 0)),    # illu_map (padded)
            ],
            scratch_shapes=[pltpu.VMEM((N_MID, OFF + s + OFF), jnp.float32)],
        ),
        compiler_params=pltpu.CompilerParams(
            dimension_semantics=("parallel",),            # batch blocks are independent
            vmem_limit_bytes=32 * 1024 * 1024,
        ),
    )(img, w1_eff, b1, dw_planes, bdw, w2p, b2p)

    # (B, C, H*W) -> NCHW is again a free reshape; drop the padded map rows.
    return (fea.reshape(batch, N_MID, H, W),
            imap[:, :N_OUT, :].reshape(batch, N_OUT, H, W))


def reference(img_nchw, params):
    """Pure-JAX reference matching the PyTorch forward exactly."""
    w1, b1, dw, bdw, w2, b2 = params
    x = img_nchw.astype(jnp.float32)
    mean_c = jnp.mean(x, axis=1, keepdims=True)
    inp = jnp.concatenate([x, mean_c], axis=1)                    # (B, 4, H, W)
    x1 = jnp.einsum('oc,bchw->bohw', w1, inp,
                    precision=jax.lax.Precision.HIGHEST) + b1.reshape(1, N_MID, 1, 1)
    fea = jax.lax.conv_general_dilated(
        x1, dw.reshape(N_MID, 1, K, K), (1, 1), ((PAD, PAD), (PAD, PAD)),
        dimension_numbers=('NCHW', 'OIHW', 'NCHW'), feature_group_count=N_MID,
        precision=jax.lax.Precision.HIGHEST) + bdw.reshape(1, N_MID, 1, 1)
    imap = jnp.einsum('oc,bchw->bohw', w2, fea,
                      precision=jax.lax.Precision.HIGHEST) + b2.reshape(1, N_OUT, 1, 1)
    return fea, imap


if __name__ == "__main__":
    key = jax.random.PRNGKey(0)
    ks = jax.random.split(key, 7)

    img = jax.random.normal(ks[0], (2, N_IMG, H, W), jnp.float32)

    # Deterministic synthetic parameters (PyTorch shapes -> layouts used here):
    #   conv1.weight (N_MID,4,1,1)      -> (N_MID, 4)      conv1.bias (N_MID,)      -> (N_MID, 1)
    #   depth_conv.weight (N_MID,1,5,5) -> (N_MID, 25)     depth_conv.bias (N_MID,) -> (N_MID, 1)
    #   conv2.weight (3,N_MID,1,1)      -> (3, N_MID)      conv2.bias (3,)          -> (3, 1)
    w1 = jax.random.normal(ks[1], (N_MID, N_IN), jnp.float32) * 0.1
    b1 = jax.random.normal(ks[2], (N_MID, 1), jnp.float32) * 0.1
    dw = jax.random.normal(ks[3], (N_MID, K * K), jnp.float32) * 0.1
    bdw = jax.random.normal(ks[4], (N_MID, 1), jnp.float32) * 0.1
    w2 = jax.random.normal(ks[5], (N_OUT, N_MID), jnp.float32) * 0.1
    b2 = jax.random.normal(ks[6], (N_OUT, 1), jnp.float32) * 0.1
    params = (w1, b1, dw, bdw, w2, b2)

    fea, imap = illumination_estimator(img, params)
    jax.block_until_ready((fea, imap))

    rfea, rmap = reference(img, params)
    assert fea.shape == (2, N_MID, H, W) and imap.shape == (2, N_OUT, H, W)
    assert jnp.allclose(fea, rfea, atol=1e-4, rtol=1e-4)
    assert jnp.allclose(imap, rmap, atol=1e-4, rtol=1e-4)
    print("KERNEL_OK")
</pallas_src>

<mosaic_0001>
module attributes {stable_mosaic.version = 11 : i64} {
  func.func @kernel(%arg0: i32, %arg1: memref<1x3x256xf32, #tpu.memory_space<vmem>>, %arg2: memref<16x3xf32, #tpu.memory_space<vmem>>, %arg3: memref<16x1xf32, #tpu.memory_space<vmem>>, %arg4: memref<25x16x256xf32, #tpu.memory_space<vmem>>, %arg5: memref<16x1xf32, #tpu.memory_space<vmem>>, %arg6: memref<8x16xf32, #tpu.memory_space<vmem>>, %arg7: memref<8x1xf32, #tpu.memory_space<vmem>>, %arg8: memref<1x16x256xf32, #tpu.memory_space<vmem>>, %arg9: memref<1x8x256xf32, #tpu.memory_space<vmem>>, %arg10: memref<16x512xf32, #tpu.memory_space<vmem>>) attributes {dimension_semantics = [#tpu.dimension_semantics<parallel>], iteration_bounds = array<i64: 2>, scalar_prefetch = 0 : i64, scratch_operands = 1 : i64, tpu.core_type = #tpu.core_type<tc>, window_params = [{transform_indices = @transform_0, window_bounds = array<i64: 1, 3, 256>}, {pipeline_mode = #tpu.pipeline_mode<synchronous>, transform_indices = @transform_1, window_bounds = array<i64: 16, 3>}, {pipeline_mode = #tpu.pipeline_mode<synchronous>, transform_indices = @transform_2, window_bounds = array<i64: 16, 1>}, {pipeline_mode = #tpu.pipeline_mode<synchronous>, transform_indices = @transform_3, window_bounds = array<i64: 25, 16, 256>}, {pipeline_mode = #tpu.pipeline_mode<synchronous>, transform_indices = @transform_4, window_bounds = array<i64: 16, 1>}, {pipeline_mode = #tpu.pipeline_mode<synchronous>, transform_indices = @transform_5, window_bounds = array<i64: 8, 16>}, {pipeline_mode = #tpu.pipeline_mode<synchronous>, transform_indices = @transform_6, window_bounds = array<i64: 8, 1>}, {transform_indices = @transform_7, window_bounds = array<i64: 1, 16, 256>}, {transform_indices = @transform_8, window_bounds = array<i64: 1, 8, 256>}]} {
    %c0 = arith.constant 0 : index
    %c0_0 = arith.constant 0 : index
    %c0_1 = arith.constant 0 : index
    %0 = vector.load %arg1[%c0, %c0_0, %c0_1] : memref<1x3x256xf32, #tpu.memory_space<vmem>>, vector<1x3x256xf32>
    %1 = vector.shape_cast %0 : vector<1x3x256xf32> to vector<3x256xf32>
    %c0_2 = arith.constant 0 : index
    %c0_3 = arith.constant 0 : index
    %2 = vector.load %arg2[%c0_2, %c0_3] : memref<16x3xf32, #tpu.memory_space<vmem>>, vector<16x3xf32>
    %cst = arith.constant dense<0.000000e+00> : vector<16x256xf32>
    %3 = tpu.matmul %2, %1, %cst {dimension_numbers = #tpu.dot_dimension_numbers<[1], [0], [0], [1], [0, 0, 1, 1], [], []>} : vector<16x3xf32>, vector<3x256xf32>, vector<16x256xf32> -> vector<16x256xf32>
    %c0_4 = arith.constant 0 : index
    %c0_5 = arith.constant 0 : index
    %4 = vector.load %arg3[%c0_4, %c0_5] : memref<16x1xf32, #tpu.memory_space<vmem>>, vector<16x1xf32>
    %5 = vector.broadcast %4 : vector<16x1xf32> to vector<16x256xf32>
    %6 = arith.addf %3, %5 : vector<16x256xf32>
    %cst_6 = arith.constant 0.000000e+00 : f32
    %7 = vector.broadcast %cst_6 : f32 to vector<16x128xf32>
    %c0_7 = arith.constant 0 : index
    %c0_8 = arith.constant 0 : index
    %8 = vector.load %arg10[%c0_7, %c0_8] : memref<16x512xf32, #tpu.memory_space<vmem>>, vector<16x128xf32>
    tpu.vector_store %arg10[%c0_7, %c0_8], %7 {strides = array<i32>} : memref<16x512xf32, #tpu.memory_space<vmem>>, vector<16x128xf32>,
    %cst_9 = arith.constant 0.000000e+00 : f32
    %9 = vector.broadcast %cst_9 : f32 to vector<16x128xf32>
    %c0_10 = arith.constant 0 : index
    %c384 = arith.constant 384 : index
    %10 = vector.load %arg10[%c0_10, %c384] : memref<16x512xf32, #tpu.memory_space<vmem>>, vector<16x128xf32>
    tpu.vector_store %arg10[%c0_10, %c384], %9 {strides = array<i32>} : memref<16x512xf32, #tpu.memory_space<vmem>>, vector<16x128xf32>,
    %c0_11 = arith.constant 0 : index
    %c128 = arith.constant 128 : index
    %11 = vector.load %arg10[%c0_11, %c128] : memref<16x512xf32, #tpu.memory_space<vmem>>, vector<16x256xf32>
    tpu.vector_store %arg10[%c0_11, %c128], %6 {strides = array<i32>} : memref<16x512xf32, #tpu.memory_space<vmem>>, vector<16x256xf32>,
    %c0_12 = arith.constant 0 : index
    %c94 = arith.constant 94 : index
    %12 = vector.load %arg10[%c0_12, %c94] : memref<16x512xf32, #tpu.memory_space<vmem>>, vector<16x256xf32>
    %c0_13 = arith.constant 0 : index
    %c0_14 = arith.constant 0 : index
    %c0_15 = arith.constant 0 : index
    %13 = vector.load %arg4[%c0_13, %c0_14, %c0_15] : memref<25x16x256xf32, #tpu.memory_space<vmem>>, vector<1x16x256xf32>
    %14 = vector.shape_cast %13 : vector<1x16x256xf32> to vector<16x256xf32>
    %15 = arith.mulf %12, %14 : vector<16x256xf32>
    %c0_16 = arith.constant 0 : index
    %c95 = arith.constant 95 : index
    %16 = vector.load %arg10[%c0_16, %c95] : memref<16x512xf32, #tpu.memory_space<vmem>>, vector<16x256xf32>
    %c1 = arith.constant 1 : index
    %c0_17 = arith.constant 0 : index
    %c0_18 = arith.constant 0 : index
    %17 = vector.load %arg4[%c1, %c0_17, %c0_18] : memref<25x16x256xf32, #tpu.memory_space<vmem>>, vector<1x16x256xf32>
    %18 = vector.shape_cast %17 : vector<1x16x256xf32> to vector<16x256xf32>
    %19 = arith.mulf %16, %18 : vector<16x256xf32>
    %20 = arith.addf %15, %19 : vector<16x256xf32>
    %c0_19 = arith.constant 0 : index
    %c96 = arith.constant 96 : index
    %21 = vector.load %arg10[%c0_19, %c96] : memref<16x512xf32, #tpu.memory_space<vmem>>, vector<16x256xf32>
    %c2 = arith.constant 2 : index
    %c0_20 = arith.constant 0 : index
    %c0_21 = arith.constant 0 : index
    %22 = vector.load %arg4[%c2, %c0_20, %c0_21] : memref<25x16x256xf32, #tpu.memory_space<vmem>>, vector<1x16x256xf32>
    %23 = vector.shape_cast %22 : vector<1x16x256xf32> to vector<16x256xf32>
    %24 = arith.mulf %21, %23 : vector<16x256xf32>
    %25 = arith.addf %20, %24 : vector<16x256xf32>
    %c0_22 = arith.constant 0 : index
    %c97 = arith.constant 97 : index
    %26 = vector.load %arg10[%c0_22, %c97] : memref<16x512xf32, #tpu.memory_space<vmem>>, vector<16x256xf32>
    %c3 = arith.constant 3 : index
    %c0_23 = arith.constant 0 : index
    %c0_24 = arith.constant 0 : index
    %27 = vector.load %arg4[%c3, %c0_23, %c0_24] : memref<25x16x256xf32, #tpu.memory_space<vmem>>, vector<1x16x256xf32>
    %28 = vector.shape_cast %27 : vector<1x16x256xf32> to vector<16x256xf32>
    %29 = arith.mulf %26, %28 : vector<16x256xf32>
    %30 = arith.addf %25, %29 : vector<16x256xf32>
    %c0_25 = arith.constant 0 : index
    %c98 = arith.constant 98 : index
    %31 = vector.load %arg10[%c0_25, %c98] : memref<16x512xf32, #tpu.memory_space<vmem>>, vector<16x256xf32>
    %c4 = arith.constant 4 : index
    %c0_26 = arith.constant 0 : index
    %c0_27 = arith.constant 0 : index
    %32 = vector.load %arg4[%c4, %c0_26, %c0_27] : memref<25x16x256xf32, #tpu.memory_space<vmem>>, vector<1x16x256xf32>
    %33 = vector.shape_cast %32 : vector<1x16x256xf32> to vector<16x256xf32>
    %34 = arith.mulf %31, %33 : vector<16x256xf32>
    %35 = arith.addf %30, %34 : vector<16x256xf32>
    %c0_28 = arith.constant 0 : index
    %c110 = arith.constant 110 : index
    %36 = vector.load %arg10[%c0_28, %c110] : memref<16x512xf32, #tpu.memory_space<vmem>>, vector<16x256xf32>
    %c5 = arith.constant 5 : index
    %c0_29 = arith.constant 0 : index
    %c0_30 = arith.constant 0 : index
    %37 = vector.load %arg4[%c5, %c0_29, %c0_30] : memref<25x16x256xf32, #tpu.memory_space<vmem>>, vector<1x16x256xf32>
    %38 = vector.shape_cast %37 : vector<1x16x256xf32> to vector<16x256xf32>
    %39 = arith.mulf %36, %38 : vector<16x256xf32>
    %c0_31 = arith.constant 0 : index
    %c111 = arith.constant 111 : index
    %40 = vector.load %arg10[%c0_31, %c111] : memref<16x512xf32, #tpu.memory_space<vmem>>, vector<16x256xf32>
    %c6 = arith.constant 6 : index
    %c0_32 = arith.constant 0 : index
    %c0_33 = arith.constant 0 : index
    %41 = vector.load %arg4[%c6, %c0_32, %c0_33] : memref<25x16x256xf32, #tpu.memory_space<vmem>>, vector<1x16x256xf32>
    %42 = vector.shape_cast %41 : vector<1x16x256xf32> to vector<16x256xf32>
    %43 = arith.mulf %40, %42 : vector<16x256xf32>
    %44 = arith.addf %39, %43 : vector<16x256xf32>
    %c0_34 = arith.constant 0 : index
    %c112 = arith.constant 112 : index
    %45 = vector.load %arg10[%c0_34, %c112] : memref<16x512xf32, #tpu.memory_space<vmem>>, vector<16x256xf32>
    %c7 = arith.constant 7 : index
    %c0_35 = arith.constant 0 : index
    %c0_36 = arith.constant 0 : index
    %46 = vector.load %arg4[%c7, %c0_35, %c0_36] : memref<25x16x256xf32, #tpu.memory_space<vmem>>, vector<1x16x256xf32>
    %47 = vector.shape_cast %46 : vector<1x16x256xf32> to vector<16x256xf32>
    %48 = arith.mulf %45, %47 : vector<16x256xf32>
    %49 = arith.addf %44, %48 : vector<16x256xf32>
    %c0_37 = arith.constant 0 : index
    %c113 = arith.constant 113 : index
    %50 = vector.load %arg10[%c0_37, %c113] : memref<16x512xf32, #tpu.memory_space<vmem>>, vector<16x256xf32>
    %c8 = arith.constant 8 : index
    %c0_38 = arith.constant 0 : index
    %c0_39 = arith.constant 0 : index
    %51 = vector.load %arg4[%c8, %c0_38, %c0_39] : memref<25x16x256xf32, #tpu.memory_space<vmem>>, vector<1x16x256xf32>
    %52 = vector.shape_cast %51 : vector<1x16x256xf32> to vector<16x256xf32>
    %53 = arith.mulf %50, %52 : vector<16x256xf32>
    %54 = arith.addf %49, %53 : vector<16x256xf32>
    %c0_40 = arith.constant 0 : index
    %c114 = arith.constant 114 : index
    %55 = vector.load %arg10[%c0_40, %c114] : memref<16x512xf32, #tpu.memory_space<vmem>>, vector<16x256xf32>
    %c9 = arith.constant 9 : index
    %c0_41 = arith.constant 0 : index
    %c0_42 = arith.constant 0 : index
    %56 = vector.load %arg4[%c9, %c0_41, %c0_42] : memref<25x16x256xf32, #tpu.memory_space<vmem>>, vector<1x16x256xf32>
    %57 = vector.shape_cast %56 : vector<1x16x256xf32> to vector<16x256xf32>
    %58 = arith.mulf %55, %57 : vector<16x256xf32>
    %59 = arith.addf %54, %58 : vector<16x256xf32>
    %c0_43 = arith.constant 0 : index
    %c126 = arith.constant 126 : index
    %60 = vector.load %arg10[%c0_43, %c126] : memref<16x512xf32, #tpu.memory_space<vmem>>, vector<16x256xf32>
    %c10 = arith.constant 10 : index
    %c0_44 = arith.constant 0 : index
    %c0_45 = arith.constant 0 : index
    %61 = vector.load %arg4[%c10, %c0_44, %c0_45] : memref<25x16x256xf32, #tpu.memory_space<vmem>>, vector<1x16x256xf32>
    %62 = vector.shape_cast %61 : vector<1x16x256xf32> to vector<16x256xf32>
    %63 = arith.mulf %60, %62 : vector<16x256xf32>
    %c0_46 = arith.constant 0 : index
    %c127 = arith.constant 127 : index
    %64 = vector.load %arg10[%c0_46, %c127] : memref<16x512xf32, #tpu.memory_space<vmem>>, vector<16x256xf32>
    %c11 = arith.constant 11 : index
    %c0_47 = arith.constant 0 : index
    %c0_48 = arith.constant 0 : index
    %65 = vector.load %arg4[%c11, %c0_47, %c0_48] : memref<25x16x256xf32, #tpu.memory_space<vmem>>, vector<1x16x256xf32>
    %66 = vector.shape_cast %65 : vector<1x16x256xf32> to vector<16x256xf32>
    %67 = arith.mulf %64, %66 : vector<16x256xf32>
    %68 = arith.addf %63, %67 : vector<16x256xf32>
    %c0_49 = arith.constant 0 : index
    %c128_50 = arith.constant 128 : index
    %69 = vector.load %arg10[%c0_49, %c128_50] : memref<16x512xf32, #tpu.memory_space<vmem>>, vector<16x256xf32>
    %c12 = arith.constant 12 : index
    %c0_51 = arith.constant 0 : index
    %c0_52 = arith.constant 0 : index
    %70 = vector.load %arg4[%c12, %c0_51, %c0_52] : memref<25x16x256xf32, #tpu.memory_space<vmem>>, vector<1x16x256xf32>
    %71 = vector.shape_cast %70 : vector<1x16x256xf32> to vector<16x256xf32>
    %72 = arith.mulf %69, %71 : vector<16x256xf32>
    %73 = arith.addf %68, %72 : vector<16x256xf32>
    %c0_53 = arith.constant 0 : index
    %c129 = arith.constant 129 : index
    %74 = vector.load %arg10[%c0_53, %c129] : memref<16x512xf32, #tpu.memory_space<vmem>>, vector<16x256xf32>
    %c13 = arith.constant 13 : index
    %c0_54 = arith.constant 0 : index
    %c0_55 = arith.constant 0 : index
    %75 = vector.load %arg4[%c13, %c0_54, %c0_55] : memref<25x16x256xf32, #tpu.memory_space<vmem>>, vector<1x16x256xf32>
    %76 = vector.shape_cast %75 : vector<1x16x256xf32> to vector<16x256xf32>
    %77 = arith.mulf %74, %76 : vector<16x256xf32>
    %78 = arith.addf %73, %77 : vector<16x256xf32>
    %c0_56 = arith.constant 0 : index
    %c130 = arith.constant 130 : index
    %79 = vector.load %arg10[%c0_56, %c130] : memref<16x512xf32, #tpu.memory_space<vmem>>, vector<16x256xf32>
    %c14 = arith.constant 14 : index
    %c0_57 = arith.constant 0 : index
    %c0_58 = arith.constant 0 : index
    %80 = vector.load %arg4[%c14, %c0_57, %c0_58] : memref<25x16x256xf32, #tpu.memory_space<vmem>>, vector<1x16x256xf32>
    %81 = vector.shape_cast %80 : vector<1x16x256xf32> to vector<16x256xf32>
    %82 = arith.mulf %79, %81 : vector<16x256xf32>
    %83 = arith.addf %78, %82 : vector<16x256xf32>
    %c0_59 = arith.constant 0 : index
    %c142 = arith.constant 142 : index
    %84 = vector.load %arg10[%c0_59, %c142] : memref<16x512xf32, #tpu.memory_space<vmem>>, vector<16x256xf32>
    %c15 = arith.constant 15 : index
    %c0_60 = arith.constant 0 : index
    %c0_61 = arith.constant 0 : index
    %85 = vector.load %arg4[%c15, %c0_60, %c0_61] : memref<25x16x256xf32, #tpu.memory_space<vmem>>, vector<1x16x256xf32>
    %86 = vector.shape_cast %85 : vector<1x16x256xf32> to vector<16x256xf32>
    %87 = arith.mulf %84, %86 : vector<16x256xf32>
    %c0_62 = arith.constant 0 : index
    %c143 = arith.constant 143 : index
    %88 = vector.load %arg10[%c0_62, %c143] : memref<16x512xf32, #tpu.memory_space<vmem>>, vector<16x256xf32>
    %c16 = arith.constant 16 : index
    %c0_63 = arith.constant 0 : index
    %c0_64 = arith.constant 0 : index
    %89 = vector.load %arg4[%c16, %c0_63, %c0_64] : memref<25x16x256xf32, #tpu.memory_space<vmem>>, vector<1x16x256xf32>
    %90 = vector.shape_cast %89 : vector<1x16x256xf32> to vector<16x256xf32>
    %91 = arith.mulf %88, %90 : vector<16x256xf32>
    %92 = arith.addf %87, %91 : vector<16x256xf32>
    %c0_65 = arith.constant 0 : index
    %c144 = arith.constant 144 : index
    %93 = vector.load %arg10[%c0_65, %c144] : memref<16x512xf32, #tpu.memory_space<vmem>>, vector<16x256xf32>
    %c17 = arith.constant 17 : index
    %c0_66 = arith.constant 0 : index
    %c0_67 = arith.constant 0 : index
    %94 = vector.load %arg4[%c17, %c0_66, %c0_67] : memref<25x16x256xf32, #tpu.memory_space<vmem>>, vector<1x16x256xf32>
    %95 = vector.shape_cast %94 : vector<1x16x256xf32> to vector<16x256xf32>
    %96 = arith.mulf %93, %95 : vector<16x256xf32>
    %97 = arith.addf %92, %96 : vector<16x256xf32>
    %c0_68 = arith.constant 0 : index
    %c145 = arith.constant 145 : index
    %98 = vector.load %arg10[%c0_68, %c145] : memref<16x512xf32, #tpu.memory_space<vmem>>, vector<16x256xf32>
    %c18 = arith.constant 18 : index
    %c0_69 = arith.constant 0 : index
    %c0_70 = arith.constant 0 : index
    %99 = vector.load %arg4[%c18, %c0_69, %c0_70] : memref<25x16x256xf32, #tpu.memory_space<vmem>>, vector<1x16x256xf32>
    %100 = vector.shape_cast %99 : vector<1x16x256xf32> to vector<16x256xf32>
    %101 = arith.mulf %98, %100 : vector<16x256xf32>
    %102 = arith.addf %97, %101 : vector<16x256xf32>
    %c0_71 = arith.constant 0 : index
    %c146 = arith.constant 146 : index
    %103 = vector.load %arg10[%c0_71, %c146] : memref<16x512xf32, #tpu.memory_space<vmem>>, vector<16x256xf32>
    %c19 = arith.constant 19 : index
    %c0_72 = arith.constant 0 : index
    %c0_73 = arith.constant 0 : index
    %104 = vector.load %arg4[%c19, %c0_72, %c0_73] : memref<25x16x256xf32, #tpu.memory_space<vmem>>, vector<1x16x256xf32>
    %105 = vector.shape_cast %104 : vector<1x16x256xf32> to vector<16x256xf32>
    %106 = arith.mulf %103, %105 : vector<16x256xf32>
    %107 = arith.addf %102, %106 : vector<16x256xf32>
    %c0_74 = arith.constant 0 : index
    %c158 = arith.constant 158 : index
    %108 = vector.load %arg10[%c0_74, %c158] : memref<16x512xf32, #tpu.memory_space<vmem>>, vector<16x256xf32>
    %c20 = arith.constant 20 : index
    %c0_75 = arith.constant 0 : index
    %c0_76 = arith.constant 0 : index
    %109 = vector.load %arg4[%c20, %c0_75, %c0_76] : memref<25x16x256xf32, #tpu.memory_space<vmem>>, vector<1x16x256xf32>
    %110 = vector.shape_cast %109 : vector<1x16x256xf32> to vector<16x256xf32>
    %111 = arith.mulf %108, %110 : vector<16x256xf32>
    %c0_77 = arith.constant 0 : index
    %c159 = arith.constant 159 : index
    %112 = vector.load %arg10[%c0_77, %c159] : memref<16x512xf32, #tpu.memory_space<vmem>>, vector<16x256xf32>
    %c21 = arith.constant 21 : index
    %c0_78 = arith.constant 0 : index
    %c0_79 = arith.constant 0 : index
    %113 = vector.load %arg4[%c21, %c0_78, %c0_79] : memref<25x16x256xf32, #tpu.memory_space<vmem>>, vector<1x16x256xf32>
    %114 = vector.shape_cast %113 : vector<1x16x256xf32> to vector<16x256xf32>
    %115 = arith.mulf %112, %114 : vector<16x256xf32>
    %116 = arith.addf %111, %115 : vector<16x256xf32>
    %c0_80 = arith.constant 0 : index
    %c160 = arith.constant 160 : index
    %117 = vector.load %arg10[%c0_80, %c160] : memref<16x512xf32, #tpu.memory_space<vmem>>, vector<16x256xf32>
    %c22 = arith.constant 22 : index
    %c0_81 = arith.constant 0 : index
    %c0_82 = arith.constant 0 : index
    %118 = vector.load %arg4[%c22, %c0_81, %c0_82] : memref<25x16x256xf32, #tpu.memory_space<vmem>>, vector<1x16x256xf32>
    %119 = vector.shape_cast %118 : vector<1x16x256xf32> to vector<16x256xf32>
    %120 = arith.mulf %117, %119 : vector<16x256xf32>
    %121 = arith.addf %116, %120 : vector<16x256xf32>
    %c0_83 = arith.constant 0 : index
    %c161 = arith.constant 161 : index
    %122 = vector.load %arg10[%c0_83, %c161] : memref<16x512xf32, #tpu.memory_space<vmem>>, vector<16x256xf32>
    %c23 = arith.constant 23 : index
    %c0_84 = arith.constant 0 : index
    %c0_85 = arith.constant 0 : index
    %123 = vector.load %arg4[%c23, %c0_84, %c0_85] : memref<25x16x256xf32, #tpu.memory_space<vmem>>, vector<1x16x256xf32>
    %124 = vector.shape_cast %123 : vector<1x16x256xf32> to vector<16x256xf32>
    %125 = arith.mulf %122, %124 : vector<16x256xf32>
    %126 = arith.addf %121, %125 : vector<16x256xf32>
    %c0_86 = arith.constant 0 : index
    %c162 = arith.constant 162 : index
    %127 = vector.load %arg10[%c0_86, %c162] : memref<16x512xf32, #tpu.memory_space<vmem>>, vector<16x256xf32>
    %c24 = arith.constant 24 : index
    %c0_87 = arith.constant 0 : index
    %c0_88 = arith.constant 0 : index
    %128 = vector.load %arg4[%c24, %c0_87, %c0_88] : memref<25x16x256xf32, #tpu.memory_space<vmem>>, vector<1x16x256xf32>
    %129 = vector.shape_cast %128 : vector<1x16x256xf32> to vector<16x256xf32>
    %130 = arith.mulf %127, %129 : vector<16x256xf32>
    %131 = arith.addf %126, %130 : vector<16x256xf32>
    %132 = arith.addf %35, %59 : vector<16x256xf32>
    %133 = arith.addf %83, %107 : vector<16x256xf32>
    %134 = arith.addf %132, %133 : vector<16x256xf32>
    %135 = arith.addf %134, %131 : vector<16x256xf32>
    %c0_89 = arith.constant 0 : index
    %c0_90 = arith.constant 0 : index
    %136 = vector.load %arg5[%c0_89, %c0_90] : memref<16x1xf32, #tpu.memory_space<vmem>>, vector<16x1xf32>
    %137 = vector.broadcast %136 : vector<16x1xf32> to vector<16x256xf32>
    %138 = arith.addf %135, %137 : vector<16x256xf32>
    %c0_91 = arith.constant 0 : index
    %c0_92 = arith.constant 0 : index
    %139 = vector.load %arg6[%c0_91, %c0_92] : memref<8x16xf32, #tpu.memory_space<vmem>>, vector<8x16xf32>
    %cst_93 = arith.constant dense<0.000000e+00> : vector<8x256xf32>
    %140 = tpu.matmul %139, %138, %cst_93 {dimension_numbers = #tpu.dot_dimension_numbers<[1], [0], [0], [1], [0, 0, 1, 1], [], []>} : vector<8x16xf32>, vector<16x256xf32>, vector<8x256xf32> -> vector<8x256xf32>
    %c0_94 = arith.constant 0 : index
    %c0_95 = arith.constant 0 : index
    %141 = vector.load %arg7[%c0_94, %c0_95] : memref<8x1xf32, #tpu.memory_space<vmem>>, vector<8x1xf32>
    %142 = vector.broadcast %141 : vector<8x1xf32> to vector<8x256xf32>
    %143 = arith.addf %140, %142 : vector<8x256xf32>
    %c0_96 = arith.constant 0 : index
    %c0_97 = arith.constant 0 : index
    %c0_98 = arith.constant 0 : index
    %144 = vector.load %arg8[%c0_96, %c0_97, %c0_98] : memref<1x16x256xf32, #tpu.memory_space<vmem>>, vector<1x16x256xf32>
    %145 = vector.shape_cast %144 : vector<1x16x256xf32> to vector<16x256xf32>
    %146 = vector.shape_cast %138 : vector<16x256xf32> to vector<1x16x256xf32>
    tpu.vector_store %arg8[%c0_96, %c0_97, %c0_98], %146 {strides = array<i32>} : memref<1x16x256xf32, #tpu.memory_space<vmem>>, vector<1x16x256xf32>,
    %c0_99 = arith.constant 0 : index
    %c0_100 = arith.constant 0 : index
    %c0_101 = arith.constant 0 : index
    %147 = vector.load %arg9[%c0_99, %c0_100, %c0_101] : memref<1x8x256xf32, #tpu.memory_space<vmem>>, vector<1x8x256xf32>
    %148 = vector.shape_cast %147 : vector<1x8x256xf32> to vector<8x256xf32>
    %149 = vector.shape_cast %143 : vector<8x256xf32> to vector<1x8x256xf32>
    tpu.vector_store %arg9[%c0_99, %c0_100, %c0_101], %149 {strides = array<i32>} : memref<1x8x256xf32, #tpu.memory_space<vmem>>, vector<1x8x256xf32>,
    return
  }
  func.func @transform_0(%arg0: i32) -> (i32, i32, i32) {
    %c0_i32 = arith.constant 0 : i32
    %c0_i32_0 = arith.constant 0 : i32
    %c0_i32_1 = arith.constant 0 : i32
    return %arg0, %c0_i32, %c0_i32_0 : i32, i32, i32
  }
  func.func @transform_1(%arg0: i32) -> (i32, i32) {
    %c0_i32 = arith.constant 0 : i32
    %c0_i32_0 = arith.constant 0 : i32
    %c0_i32_1 = arith.constant 0 : i32
    return %c0_i32, %c0_i32_0 : i32, i32
  }
  func.func @transform_2(%arg0: i32) -> (i32, i32) {
    %c0_i32 = arith.constant 0 : i32
    %c0_i32_0 = arith.constant 0 : i32
    %c0_i32_1 = arith.constant 0 : i32
    return %c0_i32, %c0_i32_0 : i32, i32
  }
  func.func @transform_3(%arg0: i32) -> (i32, i32, i32) {
    %c0_i32 = arith.constant 0 : i32
    %c0_i32_0 = arith.constant 0 : i32
    %c0_i32_1 = arith.constant 0 : i32
    %c0_i32_2 = arith.constant 0 : i32
    return %c0_i32, %c0_i32_0, %c0_i32_1 : i32, i32, i32
  }
  func.func @transform_4(%arg0: i32) -> (i32, i32) {
    %c0_i32 = arith.constant 0 : i32
    %c0_i32_0 = arith.constant 0 : i32
    %c0_i32_1 = arith.constant 0 : i32
    return %c0_i32, %c0_i32_0 : i32, i32
  }
  func.func @transform_5(%arg0: i32) -> (i32, i32) {
    %c0_i32 = arith.constant 0 : i32
    %c0_i32_0 = arith.constant 0 : i32
    %c0_i32_1 = arith.constant 0 : i32
    return %c0_i32, %c0_i32_0 : i32, i32
  }
  func.func @transform_6(%arg0: i32) -> (i32, i32) {
    %c0_i32 = arith.constant 0 : i32
    %c0_i32_0 = arith.constant 0 : i32
    %c0_i32_1 = arith.constant 0 : i32
    return %c0_i32, %c0_i32_0 : i32, i32
  }
  func.func @transform_7(%arg0: i32) -> (i32, i32, i32) {
    %c0_i32 = arith.constant 0 : i32
    %c0_i32_0 = arith.constant 0 : i32
    %c0_i32_1 = arith.constant 0 : i32
    return %arg0, %c0_i32, %c0_i32_0 : i32, i32, i32
  }
  func.func @transform_8(%arg0: i32) -> (i32, i32, i32) {
    %c0_i32 = arith.constant 0 : i32
    %c0_i32_0 = arith.constant 0 : i32
    %c0_i32_1 = arith.constant 0 : i32
    return %arg0, %c0_i32, %c0_i32_0 : i32, i32, i32
  }
}

</mosaic_0001>

<bundles_post_ra>
// kernel: tpu_custom_call.1
= control target key start
LH: loop header
LB: loop body
LE: loop exit
PB: predicated region body
PF: predicated region fallthrough
CT: control target
= control target key end

     0   :  { %14 = vsyncpa [#allocation4], 0  ;;  %s4012_s0 = inlined_call_operand.vmem [shape: f32[2,3,256], index: 0, kind: input, shape index: {}]   ;;  %s4013_s1 = inlined_call_operand.vmem [shape: f32[16,3], index: 1, kind: input, shape index: {}]   ;;  %s4014_s2 = inlined_call_operand.vmem [shape: f32[16,1], index: 2, kind: input, shape index: {}]   ;;  %s4015_s3 = inlined_call_operand.hbm [shape: f32[25,16,256], index: 3, kind: input, shape index: {}]   ;;  %s4016_s4 = inlined_call_operand.vmem [shape: f32[16,1], index: 4, kind: input, shape index: {}]   ;;  %s4017_s5 = inlined_call_operand.vmem [shape: f32[8,16], index: 5, kind: input, shape index: {}]   ;;  %s4018_s6 = inlined_call_operand.vmem [shape: f32[8,1], index: 6, kind: input, shape index: {}]   ;;  %s4019_s7 = inlined_call_operand.hbm [shape: f32[2,16,256], index: 7, kind: output, shape index: {0}]   ;;  %s4020_s8 = inlined_call_operand.hbm [shape: f32[2,8,256], index: 8, kind: output, shape index: {1}]  }
   0x1   :  { %15 = vsyncpa [#allocation5], 0 }
   0x2   :  { %17 = vsyncpa [#allocation5 + $0x1], 0 }
   0x3   :  { %18 = vsyncpa [#allocation8], 0 }
   0x4   :  { %20 = vsyncpa [#allocation8 + $0x1], 0  ;;  %s2641_s27 = smov 0   ;;  %s2643_s28 = smov 0  }
   0x5   :  { %s2645_s29 = smov 0   ;;  %s2647_s30 = smov 0  }
   0x6 LB: > { %s2662_s9 = sadd.s32 4294967295, %s2559_s30   ;;  %s2313_s10 = sadd.s32 4294967294, %s2559_s30   ;;  %s2559_s30 = sphi %s2647_s30, %s4094_s30   ;;  %s2555_s29 = sphi %s2645_s29, %s4093_s29   ;;  %s2551_s28 = sphi %s2643_s28, %s4092_s28   ;;  %s2547_s27 = sphi %s2641_s27, %s4091_s27  }
   0x7   : > { %s2666_s11 = sadd.s32 1, %s2559_s30   ;;  %s185_s12 = sadd.s32 1, %s2555_s29 }
   0x8   : > { %s182_s13 = ssub.s32 %s2559_s30, %s2666_s11  ;;  %p195_p0 = scmp.ne.s32.totalorder %s2555_s29, %s2551_s28 }
   0x9   : > { %p183_p1 = scmp.eq.s32.totalorder %s182_s13, 0  ;;  %p196_p2 = scmp.eq.s32.totalorder %s2662_s9, 1 }
   0xa   : > { %p201_p3 = scmp.ne.s32.totalorder %s2551_s28, %s2547_s27  ;;  %p202_p4 = scmp.eq.s32.totalorder %s2313_s10, 1 }
   0xb   : > { %s2677_s14 = scalar_select %p183_p1, %s2555_s29, %s185_s12  }
   0xc   : > { %p2679_p5 = por %p196_p2, %p195_p0  ;;  %p2683_p6 = por %p202_p4, %p201_p3 }
   0xd   : > { %p2314_p7 = scmp.ge.s32.totalorder %s2559_s30, 1  ;;  %p235_p8 = scmp.lt.s32.totalorder %s2559_s30, 3 }
   0xe   : > { %s4040_s15 = scalar_select %p2679_p5, 1, 0 }
   0xf   : > { %s4041_s16 = scalar_select %p2683_p6, 1, 0 }
  0x10   : > { %p4021_p9 = scmp.eq.s32.totalorder %s2662_s9, 0  ;;  %p2690_p10 = pnand %p2314_p7, %p235_p8 }
  0x11   : > { %s2561_s18 = smov [#allocation3]   ;;  %s2433_s23 = scalar_lea.hbm %s4015_s3, 12800 }
  0x12   : > { %s4042_s17 = scalar_select %p2690_p10, 1, 0 }
  0x13   : > { %s253_s19 = sshll.u32 %s2561_s18, 4  ;;  %p2351_p11 = pneg %p2690_p10  ;;  %s254_s19 = int_to_ptr.vmem [resolvable:$true] %s253_s19 }
  0x14   : > { %p2434_p13 = scmp.ne.s32.totalorder %s4015_s3, %s2433_s23  ;;  %p2440_p3 = scmp.lt.u32.totalorder %s2433_s23, %s4015_s3 }
  0x15   : > { %p2698_p12 = pnand %p4021_p9, %p2351_p11 }
  0x17   : > { %p2435_p0 = pneg %p2698_p12 }
  0x19   : > { %p2436_p1 = pnand %p2435_p0, %p2434_p13 }
  0x1b   : > { %p2437_p2 = pneg %p2436_p1 }
  0x1d   : > { %p2442_p4 = pnand %p2440_p3, %p2437_p2 }
  0x1f   : > { %2445 = shalt.err (!%p2442_p4)
}
  0x20   : > { %s2446_s12 = scalar_lea.vmem %s254_s19, 12800  ;;  %p2454_p9 = scmp.lt.s32.totalorder %s254_s19, %s254_s19 }
  0x21   : > { %p2447_p7 = scmp.ne.s32.totalorder %s254_s19, %s2446_s12  ;;  %p2455_p6 = scmp.lt.s32.totalorder %s2446_s12, %s2446_s12 }
  0x23   : > { %p2449_p8 = pnand %p2447_p7, %p2435_p0  ;;  %p2456_p5 = por %p2455_p6, %p2454_p9 }
  0x25   : > { %p2450_p11 = pneg %p2449_p8 }
  0x27   : > { %p2457_p10 = pnand %p2456_p5, %p2450_p11 }
  0x29   : > { %2460 = shalt.err (!%p2457_p10)
}
  0x2a   : > { %s2562_s13 = smov 256   ;;  %s2563_s18 = smov 16  }
  0x2b   : > { %2354 = dma.hbm_to_vmem [thread:$0]  (!%p2698_p12), %s4015_s3, 12800, %s254_s19, [#allocation4], %s2562_s13, %s2562_s13, %s2563_s18  }
  0x2c   : > { %p4044_p13 = scmp.ne.s32.totalorder %s4042_s17, 0 }
  0x2e   : > { %286 = sbr.rel (%p4044_p13) target bundleno = 1087 (0x43f), region = 48 }
  0x35   : > { %p4045_p1 = scmp.eq.s32.totalorder %s2662_s9, 0 }
  0x37   : > { %2534 = dma.done.wait (%p4045_p1), [#allocation4], 12800   ;;  %p4046_p0 = pmov %p4045_p1 }
  0x38   : > { %p325_p5 = scmp.lt.s32.totalorder %s2662_s9, 1  ;;  %v2564_v0 = vmov 0   ;;  %v2565_v1 = vmov 0.0   ;;  %v1347_v2 = vld [vmem:[#allocation3 + $0x200] sm:$0xff]  ;;  %vm354_vm0 = vcmask 1042432   ;;  %s2566_s10 = smov 15  }
  0x39   : > { %2536 = vsyncadd (%p4046_p0), [#allocation4], 4294954496  ;;  %2430 = vset.pattern.permute.xlu0 %v2564_v0  ;;  %2431 = vset.pattern.permute.xlu1 %v2564_v0  ;;  %v333_v3 = vld [vmem:[%s4014_s2] sm:$0xff]  ;;  %v1348_v6 = vld [vmem:[#allocation3 + $0x208] sm:$0xff]  ;;  %vm347_vm1 = vcmask 23552   ;;  %s2568_s23 = smov 17  }
  0x3a   : > { %s326_s20 = scalar_select %p325_p5, %s2662_s9, 1  ;;  %423 = vmatprep.mubr.f32.mxu0 %v2565_v1  ;;  %2161 = vmatprep.mubr.f32.mxu1 %v2565_v1  ;;  %v334_v7 = vld [vmem:[%s4014_s2 + $0x8] sm:$0xff]  ;;  %v331_v8 = vld [vmem:[%s4013_s1] sm:$0xff]  ;;  %v1350_v9 = vld [vmem:[#allocation3 + $0x218] sm:$0xff]  ;;  %vm1363_vm2 = vcmask 121856   ;;  %vm1429_vm3 = vcmask 130048  }
  0x3b   : > { %1355 = vrot.lane.b32.xlu1 %v1347_v2, %s2566_s10  ;;  %337 = vperm.xlu0 %2430, %v333_v3   ;;  %v1349_v10 = vld [vmem:[#allocation3 + $0x210] sm:$0xff]  ;;  %v332_v11 = vld [vmem:[%s4013_s1 + $0x8] sm:$0xff]  ;;  %v1413_v13 = vld [vmem:[#allocation3 + $0x220] sm:$0xff]  ;;  %s2569_s17 = smov 18   ;;  %s2571_s25 = smov 127   ;;  %vm1495_vm4 = vcmask 138240  }
  0x3c   : > { %s2336_s19 = sshll.u32 %s326_s20, 3  ;;  %v1414_v12 = vld [vmem:[#allocation3 + $0x228] sm:$0xff]  ;;  %v1416_v14 = vld [vmem:[#allocation3 + $0x238] sm:$0xff]  ;;  %v1415_v15 = vld [vmem:[#allocation3 + $0x230] sm:$0xff]  ;;  %s2572_s26 = smov 14   ;;  %vm1561_vm5 = vcmask 146432  }
  0x3d   : > { %s329_s24 = scalar_lea.vmem %s4012_s0, %s2336_s19  ;;  %s2567_s19 = smov 16   ;;  %v1480_v16 = vld [vmem:[#allocation3 + $0x248] sm:$0xff]  ;;  %v1479_v17 = vld [vmem:[#allocation3 + $0x240] sm:$0xff]  ;;  %v1482_v18 = vld [vmem:[#allocation3 + $0x258] sm:$0xff]  ;;  %vm798_vm6 = vcmask 908288   ;;  %vm531_vm7 = vcmask 1039360  }
  0x3e   : > { %v330_v4 = vld [vmem:[%s329_s24] sm:$0x77]  ;;  %v1481_v19 = vld [vmem:[#allocation3 + $0x250] sm:$0xff]  ;;  %v1546_v20 = vld [vmem:[#allocation3 + $0x268] sm:$0xff]  ;;  %s2570_s24 = smov 111   ;;  %s2574_s12 = smov 113  }
  0x3f   : > { %v346_v5 = vcombine.high %v330_v4, %v330_v4  ;;  %1357 = vrot.lane.b32.xlu1 %v1348_v6, %s2566_s10  ;;  %342 = vperm.xlu0 %2430, %v334_v7   ;;  %v1545_v21 = vld [vmem:[#allocation3 + $0x260] sm:$0xff]  ;;  %v1548_v22 = vld [vmem:[#allocation3 + $0x278] sm:$0xff]  ;;  %v1547_v23 = vld [vmem:[#allocation3 + $0x270] sm:$0xff]  ;;  %s2575_s13 = smov 1   ;;  %s2576_s18 = smov 31   ;;  %vm864_vm8 = vcmask 916480  }
  0x40   : > { %v783_v24 = vld [vmem:[#allocation3 + $0xc8] sm:$0xff]  ;;  %v782_v25 = vld [vmem:[#allocation3 + $0xc0] sm:$0xff]  ;;  %v785_v26 = vld [vmem:[#allocation3 + $0xd8] sm:$0xff]  ;;  %s2577_s21 = smov 114   ;;  %s2578_s22 = smov 2   ;;  %vm930_vm9 = vcmask 924672  }
  0x41   : > { %2323 = vmatprep.subr.msk.mxu0 %vm354_vm0, %v346_v5  ;;  %v784_v27 = vld [vmem:[#allocation3 + $0xd0] sm:$0xff]  ;;  %v1078_v28 = vld [vmem:[#allocation3 + $0x168] sm:$0xff]  ;;  %v1077_v29 = vld [vmem:[#allocation3 + $0x160] sm:$0xff]  ;;  %s2579_s20 = smov 32   ;;  %vm1199_vm10 = vcmask 7168   ;;  %vm1659_vm11 = vcmask 252928  }
  0x42   : > { %2324 = vmatpush1.msk.msra.mxu0 %vm354_vm0, %v330_v4  ;;  %v1080_v30 = vld [vmem:[#allocation3 + $0x178] sm:$0xff]  ;;  %v1079_v31 = vld [vmem:[#allocation3 + $0x170] sm:$0xff]  ;;  %v1316_v32 = vld [vmem:[#allocation3 + $0x1e8] sm:$0xff]  ;;  %vm996_vm12 = vcmask 932864   ;;  %vm1265_vm13 = vcmask 15360   ;;  %vm1725_vm14 = vcmask 261120  }
  0x43   : > { %2325 = vmatmul.mubr.msk.f32.vlgmr.msra.gmra.mrb[0].mxu0 %vm347_vm1, %v331_v8  ;;  %1361 = vrot.lane.b32.xlu1 %v1350_v9, %s2566_s10  ;;  %v1315_v33 = vld [vmem:[#allocation3 + $0x1e0] sm:$0xff]  ;;  %v1318_v34 = vld [vmem:[#allocation3 + $0x1f8] sm:$0xff]  ;;  %v1317_v35 = vld [vmem:[#allocation3 + $0x1f0] sm:$0xff]  ;;  %vm1791_vm15 = vcmask 269312   ;;  %vm1331_vm0 = vcmask 113664   ;;  %p4089_p9 = scmp.ne.s32.totalorder %s4040_s15, 0 }
  0x44   : > { %429 = vmatprep.mubr.f32.mxu0 %v2565_v1  ;;  %1359 = vrot.lane.b32.xlu0 %v1349_v10, %s2566_s10  ;;  %v849_v36 = vld [vmem:[#allocation3 + $0xe8] sm:$0xff]  ;;  %v848_v37 = vld [vmem:[#allocation3 + $0xe0] sm:$0xff]  ;;  %s2573_s10 = smov 112   ;;  %v851_v38 = vld [vmem:[#allocation3 + $0xf8] sm:$0xff] }
  0x45   : > { %v850_v39 = vld [vmem:[#allocation3 + $0xf0] sm:$0xff]  ;;  %v915_v40 = vld [vmem:[#allocation3 + $0x108] sm:$0xff]  ;;  %v914_v41 = vld [vmem:[#allocation3 + $0x100] sm:$0xff] }
  0x46   : > { %v917_v42 = vld [vmem:[#allocation3 + $0x118] sm:$0xff]  ;;  %v916_v43 = vld [vmem:[#allocation3 + $0x110] sm:$0xff]  ;;  %v1184_v44 = vld [vmem:[#allocation3 + $0x1a8] sm:$0xff] }
  0x47   : > { %2326 = vmatmul.mubr.msk.f32.gmra.mrb[2].mxu0 %vm347_vm1, %v332_v11  ;;  %1423 = vrot.lane.b32.xlu1 %v1414_v12, %s2567_s19  ;;  %v1183_v45 = vld [vmem:[#allocation3 + $0x1a0] sm:$0xff]  ;;  %v1186_v46 = vld [vmem:[#allocation3 + $0x1b8] sm:$0xff]  ;;  %v1185_v47 = vld [vmem:[#allocation3 + $0x1b0] sm:$0xff]  ;;  %vm598_vm1 = vcmask 1031168  }
  0x48   : > { %1421 = vrot.lane.b32.xlu0 %v1413_v13, %s2567_s19  ;;  %v1644_v48 = vld [vmem:[#allocation3 + $0x2a8] sm:$0xff]  ;;  %v1643_v49 = vld [vmem:[#allocation3 + $0x2a0] sm:$0xff]  ;;  %v1646_v50 = vld [vmem:[#allocation3 + $0x2b8] sm:$0xff] }
  0x49   : > { %v1645_v51 = vld [vmem:[#allocation3 + $0x2b0] sm:$0xff]  ;;  %v981_v52 = vld [vmem:[#allocation3 + $0x128] sm:$0xff]  ;;  %v980_v53 = vld [vmem:[#allocation3 + $0x120] sm:$0xff] }
  0x4a   : > { %v983_v54 = vld [vmem:[#allocation3 + $0x138] sm:$0xff]  ;;  %v982_v55 = vld [vmem:[#allocation3 + $0x130] sm:$0xff]  ;;  %v1250_v56 = vld [vmem:[#allocation3 + $0x1c8] sm:$0xff] }
  0x4b   : > { %1427 = vrot.lane.b32.xlu1 %v1416_v14, %s2567_s19  ;;  %v1249_v57 = vld [vmem:[#allocation3 + $0x1c0] sm:$0xff]  ;;  %v1252_v58 = vld [vmem:[#allocation3 + $0x1d8] sm:$0xff]  ;;  %v1251_v59 = vld [vmem:[#allocation3 + $0x1d0] sm:$0xff] }
  0x4c   : > { %1425 = vrot.lane.b32.xlu0 %v1415_v15, %s2567_s19  ;;  %v1710_v60 = vld [vmem:[#allocation3 + $0x2c8] sm:$0xff]  ;;  %v1709_v61 = vld [vmem:[#allocation3 + $0x2c0] sm:$0xff]  ;;  %v1712_v62 = vld [vmem:[#allocation3 + $0x2d8] sm:$0xff] }
  0x4d   : > { %v1711_v63 = vld [vmem:[#allocation3 + $0x2d0] sm:$0xff] }
  0x4f   : > { %1489 = vrot.lane.b32.xlu1 %v1480_v16, %s2568_s23 }
  0x50   : > { %1487 = vrot.lane.b32.xlu0 %v1479_v17, %s2568_s23 }
  0x53   : > { %1493 = vrot.lane.b32.xlu1 %v1482_v18, %s2568_s23 }
  0x54   : > { %1491 = vrot.lane.b32.xlu0 %v1481_v19, %s2568_s23  ;;  %s2580_s23 = smov 126  }
  0x57   : > { %1555 = vrot.lane.b32.xlu1 %v1546_v20, %s2569_s17 }
  0x58   : > { %1553 = vrot.lane.b32.xlu0 %v1545_v21, %s2569_s17  ;;  %v1775_v21 = vld [vmem:[#allocation3 + $0x2e0] sm:$0xff] }
  0x5b   : > { %1559 = vrot.lane.b32.xlu1 %v1548_v22, %s2569_s17 }
  0x5c   : > { %1557 = vrot.lane.b32.xlu0 %v1547_v23, %s2569_s17  ;;  %s2581_s17 = smov 125  }
  0x5f   : > { %792 = vrot.lane.b32.xlu1 %v783_v24, %s2570_s24  ;;  %v1776_v24 = vld [vmem:[#allocation3 + $0x2e8] sm:$0xff] }
  0x60   : > { %790 = vrot.lane.b32.xlu0 %v782_v25, %s2570_s24  ;;  %v1777_v25 = vld [vmem:[#allocation3 + $0x2f0] sm:$0xff] }
  0x63   : > { %796 = vrot.lane.b32.xlu1 %v785_v26, %s2570_s24 }
  0x64   : > { %794 = vrot.lane.b32.xlu0 %v784_v27, %s2570_s24  ;;  %s2582_s24 = smov 124  }
  0x67   : > { %1087 = vrot.lane.b32.xlu1 %v1078_v28, %s2571_s25  ;;  %v1778_v28 = vld [vmem:[#allocation3 + $0x2f8] sm:$0xff] }
  0x68   : > { %1085 = vrot.lane.b32.xlu0 %v1077_v29, %s2571_s25  ;;  %v1841_v29 = vld [vmem:[#allocation3 + $0x300] sm:$0xff] }
  0x6b   : > { %1091 = vrot.lane.b32.xlu1 %v1080_v30, %s2571_s25 }
  0x6c   : > { %1089 = vrot.lane.b32.xlu0 %v1079_v31, %s2571_s25 }
  0x6f   : > { %1325 = vrot.lane.b32.xlu1 %v1316_v32, %s2572_s26  ;;  %v1842_v32 = vld [vmem:[#allocation3 + $0x308] sm:$0xff] }
  0x70   : > { %1323 = vrot.lane.b32.xlu0 %v1315_v33, %s2572_s26  ;;  %v1843_v33 = vld [vmem:[#allocation3 + $0x310] sm:$0xff] }
  0x73   : > { %1329 = vrot.lane.b32.xlu1 %v1318_v34, %s2572_s26 }
  0x74   : > { %1327 = vrot.lane.b32.xlu0 %v1317_v35, %s2572_s26  ;;  %s2583_s26 = smov 33  }
  0x77   : > { %858 = vrot.lane.b32.xlu1 %v849_v36, %s2573_s10  ;;  %v1844_v36 = vld [vmem:[#allocation3 + $0x318] sm:$0xff] }
  0x78   : > { %856 = vrot.lane.b32.xlu0 %v848_v37, %s2573_s10  ;;  %v482_v37 = vld [vmem:[#allocation3 + $0x20] sm:$0xff] }
  0x7b   : > { %862 = vrot.lane.b32.xlu1 %v851_v38, %s2573_s10 }
  0x7c   : > { %860 = vrot.lane.b32.xlu0 %v850_v39, %s2573_s10 }
  0x7f   : > { %924 = vrot.lane.b32.xlu1 %v915_v40, %s2574_s12  ;;  %v483_v40 = vld [vmem:[#allocation3 + $0x28] sm:$0xff] }
  0x80   : > { %922 = vrot.lane.b32.xlu0 %v914_v41, %s2574_s12  ;;  %v484_v41 = vld [vmem:[#allocation3 + $0x30] sm:$0xff] }
  0x83   : > { %928 = vrot.lane.b32.xlu1 %v917_v42, %s2574_s12 }
  0x84   : > { %926 = vrot.lane.b32.xlu0 %v916_v43, %s2574_s12  ;;  %s2584_s12 = smov 34  }
  0x87   : > { %1193 = vrot.lane.b32.xlu1 %v1184_v44, %s2575_s13  ;;  %v485_v44 = vld [vmem:[#allocation3 + $0x38] sm:$0xff] }
  0x88   : > { %1191 = vrot.lane.b32.xlu0 %v1183_v45, %s2575_s13  ;;  %v750_v45 = vld [vmem:[#allocation3 + $0xa0] sm:$0xff] }
  0x8b   : > { %1197 = vrot.lane.b32.xlu1 %v1186_v46, %s2575_s13 }
  0x8c   : > { %1195 = vrot.lane.b32.xlu0 %v1185_v47, %s2575_s13  ;;  %s2585_s13 = smov 95  }
  0x8f   : > { %1653 = vrot.lane.b32.xlu1 %v1644_v48, %s2576_s18  ;;  %v751_v48 = vld [vmem:[#allocation3 + $0xa8] sm:$0xff] }
  0x90   : > { %1651 = vrot.lane.b32.xlu0 %v1643_v49, %s2576_s18  ;;  %v752_v49 = vld [vmem:[#allocation3 + $0xb0] sm:$0xff] }
  0x93   : > { %1657 = vrot.lane.b32.xlu1 %v1646_v50, %s2576_s18 }
  0x94   : > { %1655 = vrot.lane.b32.xlu0 %v1645_v51, %s2576_s18  ;;  %s2586_s18 = smov 110  }
  0x97   : > { %990 = vrot.lane.b32.xlu1 %v981_v52, %s2577_s21  ;;  %v753_v52 = vld [vmem:[#allocation3 + $0xb8] sm:$0xff] }
  0x98   : > { %988 = vrot.lane.b32.xlu0 %v980_v53, %s2577_s21  ;;  %v1046_v53 = vld [vmem:[#allocation3 + $0x140] sm:$0xff] }
  0x9b   : > { %994 = vrot.lane.b32.xlu1 %v983_v54, %s2577_s21 }
  0x9c   : > { %992 = vrot.lane.b32.xlu0 %v982_v55, %s2577_s21  ;;  %s2587_s21 = smov 96  }
  0x9f   : > { %1259 = vrot.lane.b32.xlu1 %v1250_v56, %s2578_s22  ;;  %v1047_v56 = vld [vmem:[#allocation3 + $0x148] sm:$0xff] }
  0xa0   : > { %1257 = vrot.lane.b32.xlu0 %v1249_v57, %s2578_s22  ;;  %v1048_v57 = vld [vmem:[#allocation3 + $0x150] sm:$0xff] }
  0xa3   : > { %1263 = vrot.lane.b32.xlu1 %v1252_v58, %s2578_s22 }
  0xa4   : > { %1261 = vrot.lane.b32.xlu0 %v1251_v59, %s2578_s22  ;;  %s2588_s22 = smov 97  }
  0xa7   : > { %1719 = vrot.lane.b32.xlu1 %v1710_v60, %s2579_s20  ;;  %v1049_v60 = vld [vmem:[#allocation3 + $0x158] sm:$0xff] }
  0xa8   : > { %1717 = vrot.lane.b32.xlu0 %v1709_v61, %s2579_s20  ;;  %v549_v61 = vld [vmem:[#allocation3 + $0x40] sm:$0xff] }
  0xab   : > { %1723 = vrot.lane.b32.xlu1 %v1712_v62, %s2579_s20 }
  0xac   : > { %1721 = vrot.lane.b32.xlu0 %v1711_v63, %s2579_s20  ;;  %s2589_s20 = smov 30  }
  0xad   : > { %v2753_v0 = vpop.permute.xlu1 %1355 }
  0xb1   : > { %v2755_v1 = vpop.permute.xlu1 %1357 }
  0xb2   : > { %v1374_v2 = vmul.f32 0.0, %v2755_v1 }
  0xb4   : > { %1388 = vrot.lane.b32.xlu0 %v1374_v2, %s2571_s25  ;;  %v550_v2 = vld [vmem:[#allocation3 + $0x48] sm:$0xff] }
  0xb5   : > { %v2759_v3 = vpop.permute.xlu1 %1361 }
  0xb6   : > { %v1377_v4 = vmul.f32 0.0, %v2759_v3 }
  0xb8   : > { %1394 = vrot.lane.b32.xlu1 %v1377_v4, %s2571_s25  ;;  %v551_v4 = vld [vmem:[#allocation3 + $0x50] sm:$0xff] }
  0xb9   : > { %v2763_v5 = vpop.permute.xlu1 %1423 }
  0xba   : > { %v1440_v6 = vmul.f32 0.0, %v2763_v5  ;;  %v2766_v7 = vpop.permute.xlu0 %337 }
  0xbc   : > { %1454 = vrot.lane.b32.xlu0 %v1440_v6, %s2580_s23 }
  0xbd   : > { %v2769_v8 = vpop.permute.xlu1 %1427 }
  0xbe   : > { %v1443_v9 = vmul.f32 0.0, %v2769_v8  ;;  %v2772_v10 = vpop.permute.xlu0 %342 }
  0xc0   : > { %1460 = vrot.lane.b32.xlu1 %v1443_v9, %s2580_s23 }
  0xc1   : > { %v2775_v11 = vpop.permute.xlu1 %1489 }
  0xc2   : > { %v1506_v12 = vmul.f32 0.0, %v2775_v11  ;;  %v2778_v13 = vpop.permute.xlu0 %1359 }
  0xc4   : > { %1520 = vrot.lane.b32.xlu0 %v1506_v12, %s2581_s17  ;;  %v552_v12 = vld [vmem:[#allocation3 + $0x58] sm:$0xff] }
  0xc5   : > { %v2781_v14 = vpop.permute.xlu1 %1493 }
  0xc6   : > { %v1509_v15 = vmul.f32 0.0, %v2781_v14  ;;  %v2784_v16 = vpop.permute.xlu0 %1421 }
  0xc8   : > { %1526 = vrot.lane.b32.xlu1 %v1509_v15, %s2581_s17 }
  0xc9   : > { %v2787_v17 = vpop.permute.xlu1 %1555 }
  0xca   : > { %v1572_v18 = vmul.f32 0.0, %v2787_v17  ;;  %v2790_v19 = vpop.permute.xlu0 %1425 }
  0xcc   : > { %1586 = vrot.lane.b32.xlu0 %v1572_v18, %s2582_s24 }
  0xcd   : > { %v2793_v20 = vpop.permute.xlu1 %1559 }
  0xce   : > { %v1575_v22 = vmul.f32 0.0, %v2793_v20  ;;  %v2796_v23 = vpop.permute.xlu0 %1487 }
  0xd0   : > { %1592 = vrot.lane.b32.xlu1 %v1575_v22, %s2582_s24  ;;  %1783 = vrot.lane.b32.xlu0 %v1775_v21, %s2583_s26 }
  0xd1   : > { %v2799_v26 = vpop.permute.xlu1 %792 }
  0xd2   : > { %v2801_v27 = vpop.permute.xlu0 %1491 }
  0xd4   : > { %1785 = vrot.lane.b32.xlu1 %v1776_v24, %s2583_s26  ;;  %1787 = vrot.lane.b32.xlu0 %v1777_v25, %s2583_s26 }
  0xd5   : > { %v2803_v30 = vpop.permute.xlu1 %796 }
  0xd6   : > { %v2805_v31 = vpop.permute.xlu0 %1553 }
  0xd8   : > { %1789 = vrot.lane.b32.xlu1 %v1778_v28, %s2583_s26  ;;  %1849 = vrot.lane.b32.xlu0 %v1841_v29, %s2584_s12  ;;  %s2590_s26 = smov 98  }
  0xd9   : > { %v2808_v34 = vpop.permute.xlu1 %1087 }
  0xda   : > { %v2810_v35 = vpop.permute.xlu0 %1557 }
  0xdc   : > { %1851 = vrot.lane.b32.xlu1 %v1842_v32, %s2584_s12  ;;  %1853 = vrot.lane.b32.xlu0 %v1843_v33, %s2584_s12 }
  0xdd   : > { %v2814_v38 = vpop.permute.xlu1 %1091 }
  0xde   : > { %v2816_v39 = vpop.permute.xlu0 %790 }
  0xdf   : > { %v807_v15 = vmul.f32 0.0, %v2816_v39 }
  0xe0   : > { %1855 = vrot.lane.b32.xlu1 %v1844_v36, %s2584_s12  ;;  %490 = vrot.lane.b32.xlu0 %v482_v37, %s2585_s13 }
  0xe1   : > { %v2819_v42 = vpop.permute.xlu1 %1325 }
  0xe2   : > { %v2821_v43 = vpop.permute.xlu0 %794 }
  0xe3   : > { %v810_v22 = vmul.f32 0.0, %v2821_v43 }
  0xe4   : > { %492 = vrot.lane.b32.xlu1 %v483_v40, %s2585_s13  ;;  %494 = vrot.lane.b32.xlu0 %v484_v41, %s2585_s13 }
  0xe5   : > { %v2823_v46 = vpop.permute.xlu1 %1329 }
  0xe6   : > { %v2825_v47 = vpop.permute.xlu0 %1085 }
  0xe7   : > { %v1101_v24 = vmul.f32 0.0, %v2825_v47 }
  0xe8   : > { %496 = vrot.lane.b32.xlu1 %v485_v44, %s2585_s13  ;;  %758 = vrot.lane.b32.xlu0 %v750_v45, %s2586_s18  ;;  %s2591_s13 = smov 94  }
  0xe9   : > { %v2827_v50 = vpop.permute.xlu1 %858 }
  0xea   : > { %v2829_v51 = vpop.permute.xlu0 %1089 }
  0xeb   : > { %v1104_v28 = vmul.f32 0.0, %v2829_v51 }
  0xec   : > { %760 = vrot.lane.b32.xlu1 %v751_v48, %s2586_s18  ;;  %762 = vrot.lane.b32.xlu0 %v752_v49, %s2586_s18 }
  0xed   : > { %v2831_v54 = vpop.permute.xlu1 %862 }
  0xee   : > { %v2833_v55 = vpop.permute.xlu0 %1323 }
  0xf0   : > { %764 = vrot.lane.b32.xlu1 %v753_v52, %s2586_s18  ;;  %1054 = vrot.lane.b32.xlu0 %v1046_v53, %s2580_s23  ;;  %v1364_v52 = vsel %vm1363_vm2, %v2753_v0, %v2755_v1  ;;  %v1430_v1 = vsel %vm1429_vm3, %v2784_v16, %v2763_v5 }
  0xf1   : > { %v2836_v58 = vpop.permute.xlu1 %924 }
  0xf2   : > { %v2838_v59 = vpop.permute.xlu0 %1327 }
  0xf4   : > { %1056 = vrot.lane.b32.xlu1 %v1047_v56, %s2580_s23  ;;  %1058 = vrot.lane.b32.xlu0 %v1048_v57, %s2580_s23 }
  0xf5   : > { %v2842_v62 = vpop.permute.xlu1 %928 }
  0xf6   : > { %v2844_v63 = vpop.permute.xlu0 %856 }
  0xf8   : > { %1060 = vrot.lane.b32.xlu1 %v1049_v60, %s2580_s23  ;;  %557 = vrot.lane.b32.xlu0 %v549_v61, %s2587_s21 }
  0xf9   : > { %v2850_v9 = vpop.permute.xlu1 %1193 }
  0xfa   : > { %v2848_v6 = vpop.permute.xlu0 %860 }
  0xfc   : > { %559 = vrot.lane.b32.xlu1 %v550_v2, %s2587_s21  ;;  %561 = vrot.lane.b32.xlu0 %v551_v4, %s2587_s21 }
  0xfd   : > { %v2859_v21 = vpop.permute.xlu1 %1197 }
  0xfe   : > { %v2855_v18 = vpop.permute.xlu0 %922 }
 0x100   : > { %563 = vrot.lane.b32.xlu1 %v552_v12, %s2587_s21  ;;  %819 = vrot.lane.b32.xlu0 %v807_v15, %s2571_s25  ;;  %v1496_v12 = vsel %vm1495_vm4, %v2796_v23, %v2775_v11 }
 0x101   : > { %v2870_v32 = vpop.permute.xlu1 %1653 }
 0x102   : > { %v2863_v25 = vpop.permute.xlu0 %926 }
 0x104   : > { %825 = vrot.lane.b32.xlu1 %v810_v22, %s2571_s25  ;;  %1113 = vrot.lane.b32.xlu0 %v1101_v24, %s2571_s25  ;;  %v1562_v24 = vsel %vm1561_vm5, %v2805_v31, %v2787_v17 }
 0x105   : > { %v2875_v36 = vpop.permute.xlu1 %1657 }
 0x106   : > { %v2868_v29 = vpop.permute.xlu0 %1191 }
 0x108   : > { %1119 = vrot.lane.b32.xlu1 %v1104_v28, %s2571_s25 }
 0x109   : > { %v2879_v40 = vpop.permute.xlu1 %990 }
 0x10a   : > { %v2873_v33 = vpop.permute.xlu0 %1195 }
 0x10d   : > { %v2897_v61 = vpop.permute.xlu1 %994 }
 0x10e   : > { %v2877_v37 = vpop.permute.xlu0 %1651 }
 0x111   : > { %v2914_v15 = vpop.permute.xlu1 %1259 }
 0x112   : > { %v2881_v41 = vpop.permute.xlu0 %1655 }
 0x116   : > { %v425_v44 = vpop.f32.mrb[0].mxu0  ;;  %v2892_v53 = vpop.permute.xlu0 %988 }
 0x117   : > { %v2884_v45 = vadd.f32 %v425_v44, %v2766_v7  ;;  %v427_v48 = vpop.f32.mrb[1].mxu0 }
 0x118   : > { %v2887_v49 = vadd.f32 %v427_v48, %v2766_v7  ;;  %v799_v48 = vsel %vm798_vm6, %v2816_v39, %v2799_v26 }
 0x119   : > { %4047 = vst [vmem:[#allocation12_spill] sm:$0xff] %v2884_v45  ;;  %v1372_v56 = vmul.f32 %v2753_v0, %v2884_v45  ;;  %v1438_v0 = vmul.f32 %v2784_v16, %v2884_v45  ;;  %v1504_v5 = vmul.f32 %v2796_v23, %v2884_v45  ;;  %v1570_v28 = vmul.f32 %v2805_v31, %v2884_v45  ;;  %v2931_v23 = vpop.permute.xlu1 %1263 }
 0x11a   : > { %4048 = vst [vmem:[#allocation13_spill] sm:$0xff] %v2887_v49  ;;  %v431_v57 = vpop.f32.mrb[2].mxu0  ;;  %v1373_v60 = vmul.f32 %v1364_v52, %v2887_v49  ;;  %v2904_v7 = vpop.permute.xlu0 %992  ;;  %v1439_v4 = vmul.f32 %v1430_v1, %v2887_v49  ;;  %v1505_v16 = vmul.f32 %v1496_v12, %v2887_v49  ;;  %v1571_v44 = vmul.f32 %v1562_v24, %v2887_v49 }
 0x11b   : > { %v433_v2 = vpop.f32.mrb[3].mxu0  ;;  %1384 = vrot.lane.b32.xlu0 %v1372_v56, %s2571_s25  ;;  %v808_v52 = vmul.f32 %v799_v48, %v2884_v45  ;;  %v809_v31 = vmul.f32 %v2799_v26, %v2887_v49  ;;  %v1093_v56 = vsel %vm531_vm7, %v2825_v47, %v2808_v34  ;;  %v2949_v39 = vadd.f32 %v431_v57, %v2772_v10 }
 0x11c   : > { %1386 = vrot.lane.b32.xlu1 %v1373_v60, %s2571_s25  ;;  %v1103_v26 = vmul.f32 %v2808_v34, %v2887_v49  ;;  %v800_v47 = vsel %vm798_vm6, %v2821_v43, %v2803_v30  ;;  %v1094_v34 = vsel %vm531_vm7, %v2829_v51, %v2814_v38  ;;  %v2976_v43 = vadd.f32 %v433_v2, %v2772_v10 }
 0x11d   : > { %v2951_v60 = vpop.permute.xlu1 %1719  ;;  %v811_v57 = vmul.f32 %v800_v47, %v2949_v39  ;;  %v1375_v12 = vmul.f32 %v2778_v13, %v2949_v39  ;;  %v1441_v24 = vmul.f32 %v2790_v19, %v2949_v39  ;;  %v1507_v2 = vmul.f32 %v2801_v27, %v2949_v39 }
 0x11e   : > { %v2916_v22 = vpop.permute.xlu0 %1257  ;;  %v1431_v48 = vsel %vm1429_vm3, %v2790_v19, %v2769_v8  ;;  %v1563_v47 = vsel %vm1561_vm5, %v2810_v35, %v2793_v20  ;;  %v617_v20 = vld [vmem:[#allocation3 + $0x68] sm:$0xff]  ;;  %vm1857_vm5 = vcmask 277504   ;;  %vm498_vm6 = vcmask 777216  }
 0x11f   : > { %1450 = vrot.lane.b32.xlu0 %v1438_v0, %s2580_s23  ;;  %v1102_v0 = vmul.f32 %v1093_v56, %v2884_v45  ;;  %v1497_v56 = vsel %vm1495_vm4, %v2801_v27, %v2781_v14  ;;  %vm732_vm4 = vcmask 1014784  }
 0x120   : > { %1452 = vrot.lane.b32.xlu1 %v1439_v4, %s2580_s23 }
 0x122   : > { %v2926_v11 = vpop.permute.xlu0 %1261 }
 0x123   : > { %1516 = vrot.lane.b32.xlu0 %v1504_v5, %s2581_s17  ;;  %v2968_v5 = vpop.permute.xlu1 %1723 }
 0x124   : > { %1518 = vrot.lane.b32.xlu1 %v1505_v16, %s2581_s17  ;;  %v1105_v16 = vmul.f32 %v1094_v34, %v2949_v39 }
 0x126   : > { %v2938_v17 = vpop.permute.xlu0 %1717 }
 0x127   : > { %1582 = vrot.lane.b32.xlu0 %v1570_v28, %s2582_s24 }
 0x128   : > { %1584 = vrot.lane.b32.xlu1 %v1571_v44, %s2582_s24  ;;  %v1365_v44 = vsel %vm1363_vm2, %v2778_v13, %v2759_v3  ;;  %v1442_v13 = vmul.f32 %v1431_v48, %v2976_v43  ;;  %vm665_vm2 = vcmask 1022976  }
 0x129   : > { %v1376_v10 = vmul.f32 %v1365_v44, %v2976_v43 }
 0x12a   : > { %v2953_v1 = vpop.permute.xlu0 %1721  ;;  %v2988_v51 = vpop.permute.xlu1 %1394 }
 0x12b   : > { %821 = vrot.lane.b32.xlu0 %v808_v52, %s2571_s25 }
 0x12c   : > { %823 = vrot.lane.b32.xlu1 %v809_v31, %s2571_s25  ;;  %v1573_v31 = vmul.f32 %v2810_v35, %v2949_v39  ;;  %v618_v35 = vld [vmem:[#allocation3 + $0x70] sm:$0xff] }
 0x12e   : > { %v2963_v4 = vpop.permute.xlu0 %1388 }
 0x12f   : > { %1115 = vrot.lane.b32.xlu0 %v1102_v0, %s2571_s25  ;;  %v1508_v0 = vmul.f32 %v1497_v56, %v2976_v43  ;;  %v866_v56 = vsel %vm864_vm8, %v2848_v6, %v2831_v54 }
 0x130   : > { %1117 = vrot.lane.b32.xlu1 %v1103_v26, %s2571_s25  ;;  %v812_v26 = vmul.f32 %v2803_v30, %v2976_v43  ;;  %v616_v30 = vld [vmem:[#allocation3 + $0x60] sm:$0xff] }
 0x132   : > { %v2981_v28 = vpop.permute.xlu0 %1454  ;;  %v2998_v52 = vpop.permute.xlu1 %1460 }
 0x133   : > { %827 = vrot.lane.b32.xlu0 %v811_v57, %s2571_s25  ;;  %v1574_v57 = vmul.f32 %v1563_v47, %v2976_v43  ;;  %v877_v47 = vmul.f32 %v866_v56, %v2949_v39 }
 0x134   : > { %1390 = vrot.lane.b32.xlu1 %v1375_v12, %s2571_s25  ;;  %v1106_v12 = vmul.f32 %v2814_v38, %v2976_v43  ;;  %v619_v38 = vld [vmem:[#allocation3 + $0x78] sm:$0xff] }
 0x136   : > { %v3000_v3 = vpop.permute.xlu0 %1520 }
 0x137   : > { %1121 = vrot.lane.b32.xlu0 %v1105_v16, %s2571_s25 }
 0x138   : > { %1456 = vrot.lane.b32.xlu1 %v1441_v24, %s2580_s23 }
 0x13a   : > { %v3010_v8 = vpop.permute.xlu1 %1526 }
 0x13b   : > { %1392 = vrot.lane.b32.xlu0 %v1376_v10, %s2571_s25  ;;  %v865_v10 = vsel %vm864_vm8, %v2844_v63, %v2827_v50 }
 0x13c   : > { %1522 = vrot.lane.b32.xlu1 %v1507_v2, %s2581_s17 }
 0x13e   : > { %v3012_v19 = vpop.permute.xlu0 %1586 }
 0x13f   : > { %1458 = vrot.lane.b32.xlu0 %v1442_v13, %s2580_s23  ;;  %v874_v13 = vmul.f32 %v865_v10, %v2884_v45  ;;  %v1144_v10 = vld [vmem:[#allocation3 + $0x190] sm:$0xff] }
 0x140   : > { %1588 = vrot.lane.b32.xlu1 %v1573_v31, %s2582_s24  ;;  %v875_v31 = vmul.f32 %v2827_v50, %v2887_v49  ;;  %v1143_v50 = vld [vmem:[#allocation3 + $0x188] sm:$0xff] }
 0x142   : > { %v3022_v14 = vpop.permute.xlu1 %1592  ;;  %v3024_v27 = vpop.permute.xlu0 %1783 }
 0x143   : > { %1524 = vrot.lane.b32.xlu0 %v1508_v0, %s2581_s17 }
 0x144   : > { %829 = vrot.lane.b32.xlu1 %v812_v26, %s2571_s25 }
 0x146   : > { %v3031_v34 = vpop.permute.xlu1 %1785  ;;  %v3033_v16 = vpop.permute.xlu0 %1787 }
 0x147   : > { %1590 = vrot.lane.b32.xlu0 %v1574_v57, %s2582_s24  ;;  %v878_v57 = vmul.f32 %v2831_v54, %v2976_v43 }
 0x148   : > { %1123 = vrot.lane.b32.xlu1 %v1106_v12, %s2571_s25  ;;  %v1142_v12 = vld [vmem:[#allocation3 + $0x180] sm:$0xff] }
 0x14a   : > { %v3035_v24 = vpop.permute.xlu1 %1789  ;;  %v3037_v44 = vpop.permute.xlu0 %1849 }
 0x14b   : > { %624 = vrot.lane.b32.xlu0 %v616_v30, %s2588_s22 }
 0x14c   : > { %626 = vrot.lane.b32.xlu1 %v617_v20, %s2588_s22 }
 0x14e   : > { %v3042_v2 = vpop.permute.xlu1 %1851  ;;  %v3044_v48 = vpop.permute.xlu0 %1853 }
 0x14f   : > { %628 = vrot.lane.b32.xlu0 %v618_v35, %s2588_s22  ;;  %v1146_v35 = vmul.f32 %v1142_v12, %v2884_v45 }
 0x150   : > { %630 = vrot.lane.b32.xlu1 %v619_v38, %s2588_s22  ;;  %v1147_v38 = vmul.f32 %v1143_v50, %v2887_v49  ;;  %v1612_v50 = vld [vmem:[#allocation3 + $0x288] sm:$0xff]  ;;  %s3920_s22 = sand.u32 1, %s2551_s28  }
 0x151   : > { %s2175_s18 = scalar_lea.sflag [#allocation5], %s3920_s22 }
 0x152   : > { %v3054_v0 = vpop.permute.xlu1 %1855  ;;  %v3056_v26 = vpop.permute.xlu0 %490 }
 0x153   : > { %887 = vrot.lane.b32.xlu0 %v874_v13, %s2580_s23  ;;  %v1145_v13 = vld [vmem:[#allocation3 + $0x198] sm:$0xff] }
 0x154   : > { %889 = vrot.lane.b32.xlu1 %v875_v31, %s2580_s23  ;;  %v1148_v31 = vmul.f32 %v1144_v10, %v2949_v39  ;;  %v1149_v56 = vmul.f32 %v1145_v13, %v2976_v43  ;;  %v873_v13 = vmul.f32 0.0, %v2844_v63  ;;  %v686_v63 = vld [vmem:[#allocation3 + $0x98] sm:$0xff] }
 0x156   : > { %v3063_v30 = vpop.permute.xlu1 %492  ;;  %v3065_v20 = vpop.permute.xlu0 %494 }
 0x157   : > { %893 = vrot.lane.b32.xlu0 %v877_v47, %s2580_s23  ;;  %4049 = vst [vmem:[#allocation14_spill] sm:$0xff] %v3065_v20  ;;  %v1614_v20 = vld [vmem:[#allocation3 + $0x298] sm:$0xff] }
 0x158   : > { %895 = vrot.lane.b32.xlu1 %v878_v57, %s2580_s23  ;;  %v1611_v57 = vld [vmem:[#allocation3 + $0x280] sm:$0xff] }
 0x15a   : > { %v3071_v54 = vpop.permute.xlu1 %496  ;;  %v3075_v47 = vpop.permute.xlu0 %758 }
 0x15b   : > { %1154 = vrot.lane.b32.xlu0 %v1146_v35, %s2580_s23  ;;  %4050 = vst [vmem:[#allocation15_spill] sm:$0xff] %v3075_v47  ;;  %v1613_v35 = vld [vmem:[#allocation3 + $0x290] sm:$0xff] }
 0x15c   : > { %1156 = vrot.lane.b32.xlu1 %v1147_v38, %s2580_s23 }
 0x15e   : > { %v3079_v12 = vpop.permute.xlu1 %760  ;;  %v3081_v38 = vpop.permute.xlu0 %762 }
 0x15f   : > { %1158 = vrot.lane.b32.xlu0 %v1148_v31, %s2580_s23  ;;  %4051 = vst [vmem:[#allocation16_spill] sm:$0xff] %v3081_v38  ;;  %v876_v31 = vmul.f32 0.0, %v2848_v6  ;;  %v685_v38 = vld [vmem:[#allocation3 + $0x90] sm:$0xff]  ;;  %v931_v6 = vsel %vm930_vm9, %v2855_v18, %v2836_v58 }
 0x160   : > { %1160 = vrot.lane.b32.xlu1 %v1149_v56, %s2580_s23 }
 0x162   : > { %v3083_v10 = vpop.permute.xlu1 %764  ;;  %v3087_v56 = vpop.permute.xlu0 %1054 }
 0x163   : > { %1619 = vrot.lane.b32.xlu0 %v1611_v57, %s2589_s20  ;;  %4052 = vst [vmem:[#allocation17_spill] sm:$0xff] %v3087_v56  ;;  %v683_v57 = vld [vmem:[#allocation3 + $0x80] sm:$0xff] }
 0x164   : > { %1621 = vrot.lane.b32.xlu1 %v1612_v50, %s2589_s20  ;;  %v684_v50 = vld [vmem:[#allocation3 + $0x88] sm:$0xff] }
 0x166   : > { %v3090_v47 = vpop.permute.xlu1 %1056 }
 0x167   : > { %1623 = vrot.lane.b32.xlu0 %v1613_v35, %s2589_s20  ;;  %4053 = vst [vmem:[#allocation18_spill] sm:$0xff] %v3090_v47 }
 0x168   : > { %1625 = vrot.lane.b32.xlu1 %v1614_v20, %s2589_s20  ;;  %v3093_v20 = vpop.permute.xlu0 %1058  ;;  %s2319_s20 = sshll.u32 %s3920_s22, 5 }
 0x169   : > { %4054 = vst [vmem:[#allocation19_spill] sm:$0xff] %v3093_v20 }
 0x16a   : > { %v3095_v35 = vpop.permute.xlu1 %1060 }
 0x16b   : > { %885 = vrot.lane.b32.xlu0 %v873_v13, %s2580_s23  ;;  %4055 = vst [vmem:[#allocation20_spill] sm:$0xff] %v3095_v35  ;;  %v940_v13 = vmul.f32 %v931_v6, %v2884_v45 }
 0x16c   : > { %891 = vrot.lane.b32.xlu1 %v876_v31, %s2580_s23  ;;  %v941_v31 = vmul.f32 %v2836_v58, %v2887_v49  ;;  %v3102_v56 = vpop.permute.xlu0 %557  ;;  %v1200_v58 = vsel %vm1199_vm10, %v2868_v29, %v2850_v9 }
 0x16f   : > { %691 = vrot.lane.b32.xlu0 %v683_v57, %s2590_s26  ;;  %v932_v57 = vsel %vm930_vm9, %v2863_v25, %v2842_v62  ;;  %vm565_vm9 = vcmask 785408  }
 0x170   : > { %693 = vrot.lane.b32.xlu1 %v684_v50, %s2590_s26  ;;  %v3107_v50 = vpop.permute.xlu1 %559  ;;  %v3117_v6 = vpop.permute.xlu0 %561 }
 0x173   : > { %695 = vrot.lane.b32.xlu0 %v685_v38, %s2590_s26  ;;  %v943_v38 = vmul.f32 %v932_v57, %v2949_v39  ;;  %v1201_v57 = vsel %vm1199_vm10, %v2873_v33, %v2859_v21  ;;  %vm632_vm10 = vcmask 793600  }
 0x174   : > { %697 = vrot.lane.b32.xlu1 %v686_v63, %s2590_s26  ;;  %v944_v63 = vmul.f32 %v2842_v62, %v2976_v43  ;;  %v3121_v20 = vpop.permute.xlu1 %563  ;;  %v1210_v62 = vmul.f32 0.0, %v2850_v9  ;;  %v1660_v9 = vsel %vm1659_vm11, %v2877_v37, %v2870_v32  ;;  %s317_s26 = scalar_lea.vmem [#allocation6], %s2319_s20  ;;  %s2593_s20 = smov [#allocation6]  }
 0x177   : > { %953 = vrot.lane.b32.xlu0 %v940_v13, %s2581_s17  ;;  %v1208_v13 = vmul.f32 %v2868_v29, %v2884_v45 }
 0x178   : > { %955 = vrot.lane.b32.xlu1 %v941_v31, %s2581_s17  ;;  %v1209_v31 = vmul.f32 %v1200_v58, %v2887_v49  ;;  %v3134_v29 = vpop.permute.xlu1 %825  ;;  %v1212_v58 = vmul.f32 %v1201_v57, %v2976_v43 }
 0x179   : > { %4057 = vst [vmem:[#allocation22_spill] sm:$0xff] %v3134_v29 }
 0x17b   : > { %959 = vrot.lane.b32.xlu0 %v943_v38, %s2581_s17  ;;  %v1211_v38 = vmul.f32 %v2873_v33, %v2949_v39 }
 0x17c   : > { %961 = vrot.lane.b32.xlu1 %v944_v63, %s2581_s17  ;;  %v3131_v63 = vpop.permute.xlu0 %819 }
 0x17d   : > { %4056 = vst [vmem:[#allocation21_spill] sm:$0xff] %v3131_v63  ;;  %v1342_v63 = vmul.f32 0.0, %v2819_v42 }
 0x17f   : > { %1220 = vrot.lane.b32.xlu0 %v1208_v13, %s2581_s17  ;;  %v1213_v13 = vmul.f32 0.0, %v2859_v21  ;;  %v1670_v21 = vmul.f32 0.0, %v2870_v32  ;;  %v1673_v32 = vmul.f32 0.0, %v2875_v36 }
 0x180   : > { %1222 = vrot.lane.b32.xlu1 %v1209_v31, %s2581_s17  ;;  %v3144_v33 = vpop.permute.xlu0 %1113  ;;  %v1668_v31 = vmul.f32 %v2877_v37, %v2884_v45  ;;  %v1671_v37 = vmul.f32 %v2881_v41, %v2949_v39 }
 0x181   : > { %4058 = vst [vmem:[#allocation23_spill] sm:$0xff] %v3144_v33  ;;  %v1266_v33 = vsel %vm1265_vm13, %v2916_v22, %v2914_v15 }
 0x183   : > { %1224 = vrot.lane.b32.xlu0 %v1210_v62, %s2581_s17  ;;  %v3148_v62 = vpop.permute.xlu1 %1119 }
 0x184   : > { %1226 = vrot.lane.b32.xlu1 %v1211_v38, %s2581_s17  ;;  %4059 = vst [vmem:[#allocation24_spill] sm:$0xff] %v3148_v62  ;;  %v1669_v38 = vmul.f32 %v1660_v9, %v2887_v49  ;;  %v939_v62 = vmul.f32 0.0, %v2855_v18  ;;  %v998_v18 = vsel %vm996_vm12, %v2904_v7, %v2897_v61 }
 0x187   : > { %1228 = vrot.lane.b32.xlu0 %v1212_v58, %s2581_s17  ;;  %v1661_v58 = vsel %vm1659_vm11, %v2881_v41, %v2875_v36  ;;  %vm699_vm11 = vcmask 801792  }
 0x188   : > { %1230 = vrot.lane.b32.xlu1 %v1213_v13, %s2581_s17 }
 0x18b   : > { %1680 = vrot.lane.b32.xlu0 %v1668_v31, %s2571_s25  ;;  %v1672_v31 = vmul.f32 %v1661_v58, %v2976_v43 }
 0x18c   : > { %1682 = vrot.lane.b32.xlu1 %v1669_v38, %s2571_s25 }
 0x18d   : > { %v3154_v57 = vpop.permute.xlu0 %1384 }
 0x18e   : > { %v3159_v13 = vpop.permute.xlu1 %1386 }
 0x18f   : > { %1684 = vrot.lane.b32.xlu0 %v1670_v21, %s2571_s25  ;;  %v942_v21 = vmul.f32 0.0, %v2863_v25  ;;  %v1007_v25 = vmul.f32 %v2879_v40, %v2887_v49 }
 0x190   : > { %1686 = vrot.lane.b32.xlu1 %v1671_v37, %s2571_s25  ;;  %v997_v37 = vsel %vm996_vm12, %v2892_v53, %v2879_v40  ;;  %v1274_v40 = vmul.f32 %v2916_v22, %v2884_v45  ;;  %v1277_v22 = vmul.f32 %v2926_v11, %v2949_v39  ;;  %vm766_vm12 = vcmask 900096  }
 0x191   : > { %v3165_v9 = vpop.permute.xlu0 %1450  ;;  %v1006_v36 = vmul.f32 %v997_v37, %v2884_v45  ;;  %v1010_v37 = vmul.f32 %v2897_v61, %v2976_v43  ;;  %v1276_v61 = vmul.f32 0.0, %v2914_v15  ;;  %v1279_v15 = vmul.f32 0.0, %v2931_v23 }
 0x192   : > { %v3169_v38 = vpop.permute.xlu1 %1452 }
 0x193   : > { %1688 = vrot.lane.b32.xlu0 %v1672_v31, %s2571_s25 }
 0x194   : > { %1690 = vrot.lane.b32.xlu1 %v1673_v32, %s2571_s25 }
 0x195   : > { %v3174_v41 = vpop.permute.xlu0 %1516 }
 0x196   : > { %v3179_v35 = vpop.permute.xlu1 %1518 }
 0x197   : > { %951 = vrot.lane.b32.xlu0 %v939_v62, %s2581_s17  ;;  %v1009_v62 = vmul.f32 %v998_v18, %v2949_v39  ;;  %v1275_v18 = vmul.f32 %v1266_v33, %v2887_v49 }
 0x198   : > { %957 = vrot.lane.b32.xlu1 %v942_v21, %s2581_s17 }
 0x199   : > { %v3184_v58 = vpop.permute.xlu0 %1582 }
 0x19a   : > { %v3188_v31 = vpop.permute.xlu1 %1584 }
 0x19b   : > { %1019 = vrot.lane.b32.xlu0 %v1006_v36, %s2582_s24 }
 0x19c   : > { %1021 = vrot.lane.b32.xlu1 %v1007_v25, %s2582_s24 }
 0x19d   : > { %v3195_v32 = vpop.permute.xlu0 %821 }
 0x19e   : > { %v3197_v21 = vpop.permute.xlu1 %823 }
 0x19f   : > { %1025 = vrot.lane.b32.xlu0 %v1009_v62, %s2582_s24  ;;  %v1267_v62 = vsel %vm1265_vm13, %v2926_v11, %v2931_v23  ;;  %v1734_v11 = vmul.f32 %v2938_v17, %v2884_v45  ;;  %v1736_v23 = vmul.f32 0.0, %v2951_v60  ;;  %vm1627_vm13 = vcmask 244736  }
 0x1a0   : > { %1027 = vrot.lane.b32.xlu1 %v1010_v37, %s2582_s24  ;;  %v1278_v33 = vmul.f32 %v1267_v62, %v2976_v43 }
 0x1a1   : > { %v3208_v36 = vpop.permute.xlu0 %1115 }
 0x1a2   : > { %4060 = vst [vmem:[#allocation25_spill] sm:$0xff] %v3208_v36  ;;  %v3211_v25 = vpop.permute.xlu1 %1117 }
 0x1a3   : > { %4061 = vst [vmem:[#allocation26_spill] sm:$0xff] %v3211_v25  ;;  %1286 = vrot.lane.b32.xlu0 %v1274_v40, %s2582_s24  ;;  %v1726_v25 = vsel %vm1725_vm14, %v2938_v17, %v2951_v60  ;;  %v1737_v17 = vmul.f32 %v2953_v1, %v2949_v39  ;;  %v1739_v60 = vmul.f32 0.0, %v2968_v5 }
 0x1a4   : > { %1288 = vrot.lane.b32.xlu1 %v1275_v18, %s2582_s24  ;;  %v1735_v62 = vmul.f32 %v1726_v25, %v2887_v49 }
 0x1a5   : > { %v3216_v47 = vpop.permute.xlu0 %827 }
 0x1a6   : > { %4062 = vst [vmem:[#allocation27_spill] sm:$0xff] %v3216_v47  ;;  %v3223_v37 = vpop.permute.xlu1 %1390 }
 0x1a7   : > { %1290 = vrot.lane.b32.xlu0 %v1276_v61, %s2582_s24 }
 0x1a8   : > { %1292 = vrot.lane.b32.xlu1 %v1277_v22, %s2582_s24 }
 0x1a9   : > { %v3228_v40 = vpop.permute.xlu0 %1121 }
 0x1aa   : > { %4063 = vst [vmem:[#allocation28_spill] sm:$0xff] %v3228_v40  ;;  %v3231_v18 = vpop.permute.xlu1 %1456 }
 0x1ab   : > { %1294 = vrot.lane.b32.xlu0 %v1278_v33, %s2582_s24  ;;  %v1727_v33 = vsel %vm1725_vm14, %v2953_v1, %v2968_v5  ;;  %v1005_v1 = vmul.f32 0.0, %v2892_v53  ;;  %v1800_v5 = vmul.f32 %v3024_v27, %v2884_v45  ;;  %vm466_vm14 = vcmask 769024  }
 0x1ac   : > { %1296 = vrot.lane.b32.xlu1 %v1279_v15, %s2582_s24  ;;  %v1738_v25 = vmul.f32 %v1727_v33, %v2976_v43  ;;  %v1792_v33 = vsel %vm1791_vm15, %v3024_v27, %v3031_v34  ;;  %v1802_v27 = vmul.f32 0.0, %v3031_v34 }
 0x1ad   : > { %v3240_v61 = vpop.permute.xlu0 %1392  ;;  %v1801_v53 = vmul.f32 %v1792_v33, %v2887_v49  ;;  %v1397_v33 = vsel %vm531_vm7, %v3159_v13, %v2963_v4 }
 0x1ae   : > { %v3243_v22 = vpop.permute.xlu1 %1522 }
 0x1af   : > { %1746 = vrot.lane.b32.xlu0 %v1734_v11, %s2580_s23 }
 0x1b0   : > { %1748 = vrot.lane.b32.xlu1 %v1735_v62, %s2580_s23 }
 0x1b1   : > { %v3248_v40 = vpop.permute.xlu0 %1458 }
 0x1b2   : > { %v3255_v15 = vpop.permute.xlu1 %1588 }
 0x1b3   : > { %1750 = vrot.lane.b32.xlu0 %v1736_v23, %s2580_s23  ;;  %v1008_v23 = vmul.f32 0.0, %v2904_v7  ;;  %v1332_v7 = vsel %vm1331_vm0, %v2833_v55, %v2819_v42  ;;  %v1805_v42 = vmul.f32 0.0, %v3035_v24 }
 0x1b4   : > { %1752 = vrot.lane.b32.xlu1 %v1737_v17, %s2580_s23 }
 0x1b5   : > { %v3260_v11 = vpop.permute.xlu0 %1524 }
 0x1b6   : > { %v3263_v62 = vpop.permute.xlu1 %829 }
 0x1b7   : > { %1754 = vrot.lane.b32.xlu0 %v1738_v25, %s2580_s23 }
 0x1b8   : > { %1756 = vrot.lane.b32.xlu1 %v1739_v60, %s2580_s23 }
 0x1b9   : > { %v3268_v36 = vpop.permute.xlu0 %1590 }
 0x1ba   : > { %v3271_v17 = vpop.permute.xlu1 %1123 }
 0x1bb   : > { %4064 = vst [vmem:[#allocation29_spill] sm:$0xff] %v3271_v17  ;;  %1017 = vrot.lane.b32.xlu0 %v1005_v1, %s2582_s24  ;;  %v1396_v1 = vsel %vm531_vm7, %v3154_v57, %v3159_v13  ;;  %v1803_v17 = vmul.f32 %v3033_v16, %v2949_v39  ;;  %v1793_v57 = vsel %vm1791_vm15, %v3033_v16, %v3035_v24 }
 0x1bc   : > { %1023 = vrot.lane.b32.xlu1 %v1008_v23, %s2582_s24  ;;  %v1340_v23 = vmul.f32 %v2833_v55, %v2884_v45  ;;  %v1462_v55 = vsel %vm598_vm1, %v3165_v9, %v3169_v38  ;;  %v1463_v13 = vsel %vm598_vm1, %v3169_v38, %v2981_v28  ;;  %v1528_v16 = vsel %vm665_vm2, %v3174_v41, %v3179_v35 }
 0x1bd   : > { %v3280_v25 = vpop.permute.xlu0 %624  ;;  %v1804_v9 = vmul.f32 %v1793_v57, %v2976_v43  ;;  %v1398_v38 = vsel %vm531_vm7, %v3223_v37, %v3240_v61  ;;  %v1594_v41 = vsel %vm732_vm4, %v3184_v58, %v3188_v31  ;;  %v1595_v37 = vsel %vm732_vm4, %v3188_v31, %v3012_v19 }
 0x1be   : > { %v3283_v60 = vpop.permute.xlu1 %626  ;;  %v1406_v29 = vadd.f32 %v1396_v1, %v1340_v23  ;;  %v1529_v1 = vsel %vm665_vm2, %v3179_v35, %v3000_v3  ;;  %v1408_v35 = vadd.f32 %v2963_v4, %v1342_v63  ;;  %v1464_v24 = vsel %vm598_vm1, %v3231_v18, %v3248_v40 }
 0x1bf   : > { %1812 = vrot.lane.b32.xlu0 %v1800_v5, %s2581_s17  ;;  %v1399_v4 = vsel %vm531_vm7, %v3240_v61, %v2988_v51  ;;  %v1530_v18 = vsel %vm665_vm2, %v3243_v22, %v3260_v11  ;;  %v1465_v61 = vsel %vm598_vm1, %v3248_v40, %v2998_v52 }
 0x1c0   : > { %1814 = vrot.lane.b32.xlu1 %v1801_v53, %s2581_s17  ;;  %v1341_v53 = vmul.f32 %v1332_v7, %v2887_v49  ;;  %v1472_v7 = vadd.f32 %v1462_v55, %v1406_v29  ;;  %v1343_v29 = vmul.f32 %v2838_v59, %v2949_v39  ;;  %v1474_v31 = vadd.f32 %v2981_v28, %v1408_v35 }
 0x1c1   : > { %v3299_v5 = vpop.permute.xlu0 %628 }
 0x1c2   : > { %v3310_v34 = vpop.permute.xlu1 %630  ;;  %v1407_v47 = vadd.f32 %v1397_v33, %v1341_v53  ;;  %v1538_v33 = vadd.f32 %v1528_v16, %v1472_v7  ;;  %v1409_v63 = vadd.f32 %v1398_v38, %v1343_v29  ;;  %v1540_v28 = vadd.f32 %v3000_v3, %v1474_v31 }
 0x1c3   : > { %1816 = vrot.lane.b32.xlu0 %v1802_v27, %s2581_s17 }
 0x1c4   : > { %1818 = vrot.lane.b32.xlu1 %v1803_v17, %s2581_s17  ;;  %v1473_v23 = vadd.f32 %v1463_v13, %v1407_v47  ;;  %v1333_v47 = vsel %vm1331_vm0, %v2838_v59, %v2823_v46  ;;  %v1604_v57 = vadd.f32 %v1594_v41, %v1538_v33  ;;  %v1345_v59 = vmul.f32 0.0, %v2823_v46 }
 0x1c5   : > { %v3328_v27 = vpop.permute.xlu0 %887  ;;  %v1344_v53 = vmul.f32 %v1333_v47, %v2976_v43  ;;  %v1475_v16 = vadd.f32 %v1464_v24, %v1409_v63  ;;  %v1531_v46 = vsel %vm665_vm2, %v3260_v11, %v3010_v8  ;;  %v1606_v40 = vadd.f32 %v3012_v19, %v1540_v28 }
 0x1c6   : > { %v3336_v17 = vpop.permute.xlu1 %889  ;;  %v1539_v58 = vadd.f32 %v1529_v1, %v1473_v23  ;;  %v1596_v1 = vsel %vm732_vm4, %v3255_v15, %v3268_v36  ;;  %v1411_v22 = vadd.f32 %v2988_v51, %v1345_v59  ;;  %v1597_v15 = vsel %vm732_vm4, %v3268_v36, %v3022_v14  ;;  %v451_v59 = vld [vmem:[#allocation3 + $0x8] sm:$0xff] }
 0x1c7   : > { %1820 = vrot.lane.b32.xlu0 %v1804_v9, %s2581_s17  ;;  %v1410_v7 = vadd.f32 %v1399_v4, %v1344_v53  ;;  %v1541_v38 = vadd.f32 %v1530_v18, %v1475_v16  ;;  %v1858_v36 = vsel %vm1857_vm5, %v3037_v44, %v3042_v2  ;;  %v1869_v4 = vmul.f32 %v3044_v48, %v2949_v39  ;;  %v450_v18 = vld [vmem:[#allocation3] sm:$0xff] }
 0x1c8   : > { %1822 = vrot.lane.b32.xlu1 %v1805_v42, %s2581_s17  ;;  %v1605_v13 = vadd.f32 %v1595_v37, %v1539_v58  ;;  %v1477_v23 = vadd.f32 %v2998_v52, %v1411_v22  ;;  %v1867_v24 = vmul.f32 %v1858_v36, %v2887_v49  ;;  %v499_v28 = vsel %vm498_vm6, %v3056_v26, %v3063_v30 }
 0x1c9   : > { %v3358_v55 = vpop.permute.xlu0 %893  ;;  %v1476_v42 = vadd.f32 %v1465_v61, %v1410_v7  ;;  %v1607_v41 = vadd.f32 %v1596_v1, %v1541_v38  ;;  %v452_v61 = vld [vmem:[#allocation3 + $0x10] sm:$0xff]  ;;  %v508_v1 = vmul.f32 %v499_v28, %v2884_v45 }
 0x1ca   : > { %v3364_v9 = vpop.permute.xlu1 %895  ;;  %v1543_v11 = vadd.f32 %v3010_v8, %v1477_v23  ;;  %v1866_v8 = vmul.f32 %v3037_v44, %v2884_v45  ;;  %v1859_v44 = vsel %vm1857_vm5, %v3044_v48, %v3054_v0  ;;  %v4065_v38 = vld [vmem:[#allocation14_spill] sm:$0xff] }
 0x1cb   : > { %1946 = vrot.lane.b32.xlu0 %v1604_v57, %s2573_s10  ;;  %v1542_v29 = vadd.f32 %v1531_v46, %v1476_v42  ;;  %v1870_v31 = vmul.f32 %v1859_v44, %v2976_v43  ;;  %v509_v46 = vmul.f32 %v3063_v30, %v2887_v49  ;;  %v507_v30 = vmul.f32 0.0, %v3056_v26 }
 0x1cc   : > { %1948 = vrot.lane.b32.xlu1 %v1605_v13, %s2573_s10  ;;  %v1609_v52 = vadd.f32 %v3022_v14, %v1543_v11  ;;  %v1868_v14 = vmul.f32 0.0, %v3042_v2  ;;  %v1871_v2 = vmul.f32 0.0, %v3054_v0  ;;  %v453_v0 = vld [vmem:[#allocation3 + $0x18] sm:$0xff]  ;;  %v576_v26 = vmul.f32 %v3107_v50, %v2887_v49 }
 0x1cd   : > { %v3377_v3 = vpop.permute.xlu0 %1154  ;;  %v1608_v19 = vadd.f32 %v1597_v15, %v1542_v29 }
 0x1ce   : > { %v3383_v51 = vpop.permute.xlu1 %1156 }
 0x1cf   : > { %1950 = vrot.lane.b32.xlu0 %v1606_v40, %s2573_s10  ;;  %v500_v40 = vsel %vm498_vm6, %v4065_v38, %v3071_v54 }
 0x1d0   : > { %1952 = vrot.lane.b32.xlu1 %v1607_v41, %s2573_s10  ;;  %v511_v23 = vmul.f32 %v500_v40, %v2949_v39  ;;  %v512_v41 = vmul.f32 %v3071_v54, %v2976_v43 }
 0x1d1   : > { %v3388_v35 = vpop.permute.xlu0 %1158 }
 0x1d2   : > { %v3391_v33 = vpop.permute.xlu1 %1160 }
 0x1d3   : > { %1954 = vrot.lane.b32.xlu0 %v1608_v19, %s2573_s10  ;;  %v510_v19 = vmul.f32 0.0, %v4065_v38 }
 0x1d4   : > { %1956 = vrot.lane.b32.xlu1 %v1609_v52, %s2573_s10  ;;  %v566_v52 = vsel %vm565_vm9, %v3102_v56, %v3107_v50  ;;  %v574_v50 = vmul.f32 0.0, %v3102_v56  ;;  %v643_v56 = vmul.f32 %v3283_v60, %v2887_v49 }
 0x1d5   : > { %v3400_v37 = vpop.permute.xlu0 %1619  ;;  %v575_v54 = vmul.f32 %v566_v52, %v2884_v45 }
 0x1d6   : > { %v3403_v47 = vpop.permute.xlu1 %1621 }
 0x1d7   : > { %1878 = vrot.lane.b32.xlu0 %v1866_v8, %s2582_s24 }
 0x1d8   : > { %1880 = vrot.lane.b32.xlu1 %v1867_v24, %s2582_s24  ;;  %v567_v24 = vsel %vm565_vm9, %v3117_v6, %v3121_v20 }
 0x1d9   : > { %v3408_v58 = vpop.permute.xlu0 %1623 }
 0x1da   : > { %v3415_v63 = vpop.permute.xlu1 %1625 }
 0x1db   : > { %1882 = vrot.lane.b32.xlu0 %v1868_v14, %s2582_s24 }
 0x1dc   : > { %1884 = vrot.lane.b32.xlu1 %v1869_v4, %s2582_s24  ;;  %v578_v4 = vmul.f32 %v567_v24, %v2949_v39 }
 0x1dd   : > { %v3420_v57 = vpop.permute.xlu0 %885 }
 0x1de   : > { %v3423_v53 = vpop.permute.xlu1 %891 }
 0x1df   : > { %1886 = vrot.lane.b32.xlu0 %v1870_v31, %s2582_s24  ;;  %v579_v31 = vmul.f32 %v3121_v20, %v2976_v43 }
 0x1e0   : > { %1888 = vrot.lane.b32.xlu1 %v1871_v2, %s2582_s24 }
 0x1e1   : > { %v3427_v48 = vpop.permute.xlu0 %691 }
 0x1e2   : > { %v3429_v13 = vpop.permute.xlu1 %693 }
 0x1e3   : > { %458 = vrot.lane.b32.xlu0 %v450_v18, %s2591_s13 }
 0x1e4   : > { %460 = vrot.lane.b32.xlu1 %v451_v59, %s2591_s13  ;;  %v577_v59 = vmul.f32 0.0, %v3117_v6 }
 0x1e5   : > { %v3431_v16 = vpop.permute.xlu0 %695 }
 0x1e6   : > { %v3435_v7 = vpop.permute.xlu1 %697 }
 0x1e7   : > { %462 = vrot.lane.b32.xlu0 %v452_v61, %s2591_s13  ;;  %v633_v61 = vsel %vm632_vm10, %v3280_v25, %v3283_v60 }
 0x1e8   : > { %464 = vrot.lane.b32.xlu1 %v453_v0, %s2591_s13  ;;  %v642_v20 = vmul.f32 %v633_v61, %v2884_v45  ;;  %v832_v61 = vsel %vm531_vm7, %v3195_v32, %v3197_v21 }
 0x1e9   : > { %v3438_v22 = vpop.permute.xlu0 %953 }
 0x1ea   : > { %v3444_v42 = vpop.permute.xlu1 %955 }
 0x1eb   : > { %521 = vrot.lane.b32.xlu0 %v508_v1, %s2571_s25  ;;  %v634_v1 = vsel %vm632_vm10, %v3299_v5, %v3310_v34 }
 0x1ec   : > { %523 = vrot.lane.b32.xlu1 %v509_v46, %s2571_s25  ;;  %v645_v38 = vmul.f32 %v634_v1, %v2949_v39 }
 0x1ed   : > { %v3449_v15 = vpop.permute.xlu0 %959 }
 0x1ee   : > { %v3453_v29 = vpop.permute.xlu1 %961 }
 0x1ef   : > { %527 = vrot.lane.b32.xlu0 %v511_v23, %s2571_s25  ;;  %v646_v23 = vmul.f32 %v3310_v34, %v2976_v43  ;;  %v644_v34 = vmul.f32 0.0, %v3299_v5  ;;  %v710_v5 = vmul.f32 %v3429_v13, %v2887_v49 }
 0x1f0   : > { %529 = vrot.lane.b32.xlu1 %v512_v41, %s2571_s25 }
 0x1f1   : > { %v3458_v11 = vpop.permute.xlu0 %1220 }
 0x1f2   : > { %v3464_v36 = vpop.permute.xlu1 %1222 }
 0x1f3   : > { %519 = vrot.lane.b32.xlu0 %v507_v30, %s2571_s25 }
 0x1f4   : > { %525 = vrot.lane.b32.xlu1 %v510_v19, %s2571_s25  ;;  %v641_v19 = vmul.f32 0.0, %v3280_v25  ;;  %v4068_v25 = vld [vmem:[#allocation15_spill] sm:$0xff]  ;;  %s2193_s25 = sshll.u32 %s317_s26, 4  ;;  %s3931_s25 = int_to_ptr.vmem [resolvable:$true] %s2193_s25 }
 0x1f5   : > { %v3469_v8 = vpop.permute.xlu0 %1224 }
 0x1f6   : > { %v3476_v14 = vpop.permute.xlu1 %1226 }
 0x1f7   : > { %588 = vrot.lane.b32.xlu0 %v575_v54, %s2580_s23  ;;  %v700_v54 = vsel %vm699_vm11, %v3427_v48, %v3429_v13  ;;  %v777_v13 = vmul.f32 %v3079_v12, %v2887_v49 }
 0x1f8   : > { %590 = vrot.lane.b32.xlu1 %v576_v26, %s2580_s23  ;;  %v709_v24 = vmul.f32 %v700_v54, %v2884_v45 }
 0x1f9   : > { %v3481_v44 = vpop.permute.xlu0 %1228  ;;  %v843_v54 = vadd.f32 %v3197_v21, %v777_v13  ;;  %v711_v13 = vmul.f32 0.0, %v3431_v16 }
 0x1fa   : > { %v3485_v2 = vpop.permute.xlu1 %1230 }
 0x1fb   : > { %594 = vrot.lane.b32.xlu0 %v578_v4, %s2580_s23  ;;  %v909_v21 = vadd.f32 %v3336_v17, %v843_v54 }
 0x1fc   : > { %596 = vrot.lane.b32.xlu1 %v579_v31, %s2580_s23  ;;  %v767_v31 = vsel %vm766_vm12, %v4068_v25, %v3079_v12 }
 0x1fd   : > { %v3490_v18 = vpop.permute.xlu0 %1680 }
 0x1fe   : > { %v3495_v0 = vpop.permute.xlu1 %1682 }
 0x1ff   : > { %586 = vrot.lane.b32.xlu0 %v574_v50, %s2580_s23  ;;  %v701_v50 = vsel %vm699_vm11, %v3431_v16, %v3435_v7 }
 0x200   : > { %592 = vrot.lane.b32.xlu1 %v577_v59, %s2580_s23  ;;  %s2337_s23 = sshll.u32 %s2662_s9, 9 }
 0x201   : > { %v3500_v28 = vpop.permute.xlu0 %1684 }
 0x202   : > { %v3509_v6 = vsel %vm531_vm7, %v3495_v0, %v3500_v28  ;;  %v1687_v46 = vpop.permute.xlu1 %1686 }
 0x203   : > { %655 = vrot.lane.b32.xlu0 %v642_v20, %s2581_s17  ;;  %v776_v20 = vmul.f32 %v767_v31, %v2884_v45  ;;  %v964_v31 = vsel %vm665_vm2, %v3438_v22, %v3444_v42 }
 0x204   : > { %657 = vrot.lane.b32.xlu1 %v643_v56, %s2581_s17  ;;  %v712_v56 = vmul.f32 %v701_v50, %v2949_v39 }
 0x205   : > { %v1689_v40 = vpop.permute.xlu0 %1688 }
 0x206   : > { %v3517_v60 = vsel %vm531_vm7, %v1687_v46, %v1689_v40  ;;  %v3519_v41 = vpop.permute.xlu1 %1690  ;;  %v4069_v46 = vld [vmem:[#allocation16_spill] sm:$0xff] }
 0x207   : > { %4066 = vst [vmem:[#allocation14_spill] sm:$0xff] %v3519_v41  ;;  %v3523_v30 = vsel %vm531_vm7, %v1689_v40, %v3519_v41  ;;  %661 = vrot.lane.b32.xlu0 %v645_v38, %s2581_s17  ;;  %v768_v38 = vsel %vm766_vm12, %v4069_v46, %v3083_v10  ;;  %v898_v40 = vsel %vm598_vm1, %v3328_v27, %v3336_v17 }
 0x208   : > { %4067 = vst [vmem:[#allocation30_spill] sm:$0xff] %v3523_v30  ;;  %663 = vrot.lane.b32.xlu1 %v646_v23, %s2581_s17  ;;  %v713_v23 = vmul.f32 %v3435_v7, %v2976_v43  ;;  %v780_v7 = vmul.f32 %v3083_v10, %v2976_v43  ;;  %v966_v17 = vsel %vm665_vm2, %v3449_v15, %v3453_v29 }
 0x209   : > { %v3528_v52 = vpop.permute.xlu0 %951 }
 0x20a   : > { %v3534_v26 = vpop.permute.xlu1 %957 }
 0x20b   : > { %653 = vrot.lane.b32.xlu0 %v641_v19, %s2581_s17 }
 0x20c   : > { %659 = vrot.lane.b32.xlu1 %v644_v34, %s2581_s17  ;;  %v842_v34 = vadd.f32 %v832_v61, %v776_v20  ;;  %v708_v61 = vmul.f32 0.0, %v3427_v48  ;;  %v846_v48 = vadd.f32 %v3263_v62, %v780_v7 }
 0x20d   : > { %v3539_v4 = vpop.permute.xlu0 %1019 }
 0x20e   : > { %v1022_v59 = vpop.permute.xlu1 %1021  ;;  %v908_v50 = vadd.f32 %v898_v40, %v842_v34  ;;  %v975_v40 = vadd.f32 %v3444_v42, %v909_v21  ;;  %v912_v30 = vadd.f32 %v3364_v9, %v846_v48 }
 0x20f   : > { %722 = vrot.lane.b32.xlu0 %v709_v24, %s2582_s24  ;;  %v4070_v24 = vld [vmem:[#allocation27_spill] sm:$0xff] }
 0x210   : > { %724 = vrot.lane.b32.xlu1 %v710_v5, %s2582_s24  ;;  %v834_v12 = vsel %vm531_vm7, %v4070_v24, %v3263_v62  ;;  %v779_v5 = vmul.f32 %v768_v38, %v2949_v39  ;;  %v974_v10 = vadd.f32 %v964_v31, %v908_v50  ;;  %v978_v42 = vadd.f32 %v3453_v29, %v912_v30  ;;  %v2044_v29 = vld [vmem:[%s4016_s4 + $0x8] sm:$0xff] }
 0x211   : > { %v3556_v1 = vpop.permute.xlu0 %1025 }
 0x212   : > { %v1028_v19 = vpop.permute.xlu1 %1027  ;;  %v845_v41 = vadd.f32 %v834_v12, %v779_v5  ;;  %v1041_v12 = vadd.f32 %v1022_v59, %v975_v40  ;;  %v778_v40 = vmul.f32 0.0, %v4069_v46  ;;  %v965_v46 = vsel %vm665_vm2, %v3534_v26, %v3449_v15 }
 0x213   : > { %728 = vrot.lane.b32.xlu0 %v712_v56, %s2582_s24  ;;  %v900_v56 = vsel %vm598_vm1, %v3358_v55, %v3364_v9  ;;  %v1032_v31 = vsel %vm732_vm4, %v3556_v1, %v1028_v19  ;;  %v1044_v50 = vadd.f32 %v1028_v19, %v978_v42  ;;  %v2043_v9 = vld [vmem:[%s4016_s4] sm:$0xff]  ;;  %v4071_v19 = vld [vmem:[#allocation21_spill] sm:$0xff] }
 0x214   : > { %730 = vrot.lane.b32.xlu1 %v713_v23, %s2582_s24  ;;  %v1030_v23 = vsel %vm732_vm4, %v3539_v4, %v1022_v59  ;;  %v911_v16 = vadd.f32 %v900_v56, %v845_v41  ;;  %v831_v56 = vsel %vm531_vm7, %v4071_v19, %v3195_v32 }
 0x215   : > { %v3581_v20 = vpop.permute.xlu0 %1286  ;;  %v1040_v34 = vadd.f32 %v1030_v23, %v974_v10  ;;  %v775_v23 = vmul.f32 0.0, %v4068_v25  ;;  %v4072_v10 = vld [vmem:[#allocation22_spill] sm:$0xff]  ;;  %v963_v25 = vsel %vm665_vm2, %v3528_v52, %v3438_v22 }
 0x216   : > { %v3590_v38 = vpop.permute.xlu1 %1288  ;;  %v977_v62 = vadd.f32 %v966_v17, %v911_v16  ;;  %v833_v48 = vsel %vm531_vm7, %v4072_v10, %v4070_v24  ;;  %v897_v17 = vsel %vm598_vm1, %v3420_v57, %v3328_v27  ;;  %v1692_v10 = vsel %vm531_vm7, %v3490_v18, %v3495_v0 }
 0x217   : > { %720 = vrot.lane.b32.xlu0 %v708_v61, %s2582_s24  ;;  %v841_v16 = vadd.f32 %v831_v56, %v775_v23 }
 0x218   : > { %726 = vrot.lane.b32.xlu1 %v711_v13, %s2582_s24  ;;  %v1043_v7 = vadd.f32 %v1032_v31, %v977_v62 }
 0x219   : > { %v3599_v54 = vpop.permute.xlu0 %1290  ;;  %v907_v24 = vadd.f32 %v897_v17, %v841_v16  ;;  %v1636_v16 = vmul.f32 %v3400_v37, %v2884_v45 }
 0x21a   : > { %v3604_v5 = vpop.permute.xlu1 %1292 }
 0x21b   : > { %1914 = vrot.lane.b32.xlu0 %v1040_v34, %s2573_s10  ;;  %v899_v34 = vsel %vm598_vm1, %v3423_v53, %v3358_v55  ;;  %v973_v57 = vadd.f32 %v963_v25, %v907_v24  ;;  %v4077_v25 = vld [vmem:[#allocation23_spill] sm:$0xff] }
 0x21c   : > { %1916 = vrot.lane.b32.xlu1 %v1041_v12, %s2573_s10  ;;  %v844_v12 = vadd.f32 %v833_v48, %v778_v40  ;;  %v4074_v48 = vld [vmem:[#allocation18_spill] sm:$0xff]  ;;  %v4075_v40 = vld [vmem:[#allocation17_spill] sm:$0xff] }
 0x21d   : > { %v3609_v41 = vpop.permute.xlu0 %1294  ;;  %v1062_v17 = vsel %vm598_vm1, %v4075_v40, %v4074_v48  ;;  %v1070_v18 = vmul.f32 0.0, %v4075_v40  ;;  %v1072_v0 = vmul.f32 %v4074_v48, %v2887_v49  ;;  %v4080_v40 = vld [vmem:[#allocation26_spill] sm:$0xff] }
 0x21e   : > { %v3611_v61 = vpop.permute.xlu1 %1296  ;;  %v910_v27 = vadd.f32 %v899_v34, %v844_v12  ;;  %v1628_v34 = vsel %vm1627_vm13, %v3400_v37, %v3403_v47  ;;  %v4076_v12 = vld [vmem:[#allocation25_spill] sm:$0xff]  ;;  %v1071_v37 = vmul.f32 %v1062_v17, %v2884_v45 }
 0x21f   : > { %1920 = vrot.lane.b32.xlu0 %v1043_v7, %s2573_s10  ;;  %v1125_v24 = vsel %vm531_vm7, %v4077_v25, %v4076_v12  ;;  %v1126_v48 = vsel %vm531_vm7, %v4076_v12, %v4080_v40 }
 0x220   : > { %1922 = vrot.lane.b32.xlu1 %v1044_v50, %s2573_s10  ;;  %v976_v42 = vadd.f32 %v965_v46, %v910_v27 }
 0x221   : > { %v1747_v59 = vpop.permute.xlu0 %1746 }
 0x222   : > { %v1749_v30 = vpop.permute.xlu1 %1748 }
 0x223   : > { %2047 = vperm.xlu0 %2430, %v2043_v9   ;;  %v1758_v46 = vsel %vm598_vm1, %v1747_v59, %v1749_v30  ;;  %v1637_v59 = vmul.f32 %v1628_v34, %v2887_v49 }
 0x224   : > { %2052 = vperm.xlu1 %2431, %v2044_v29  }
 0x225   : > { %v3621_v21 = vpop.permute.xlu0 %1750 }
 0x226   : > { %v3626_v13 = vpop.permute.xlu1 %1752 }
 0x229   : > { %v3639_v32 = vpop.permute.xlu0 %1754 }
 0x22a   : > { %v3644_v31 = vpop.permute.xlu1 %1756 }
 0x22d   : > { %v1018_v62 = vpop.permute.xlu0 %1017 }
 0x22e   : > { %v1029_v55 = vsel %vm732_vm4, %v1018_v62, %v3539_v4  ;;  %v1024_v53 = vpop.permute.xlu1 %1023  ;;  %v4079_v62 = vld [vmem:[#allocation19_spill] sm:$0xff] }
 0x22f   : > { %v1039_v7 = vadd.f32 %v1029_v55, %v973_v57  ;;  %v1031_v50 = vsel %vm732_vm4, %v1024_v53, %v3556_v1  ;;  %v4078_v57 = vld [vmem:[#allocation20_spill] sm:$0xff]  ;;  %v1702_v55 = vadd.f32 %v1692_v10, %v1636_v16 }
 0x230   : > { %v1042_v22 = vadd.f32 %v1031_v50, %v976_v42  ;;  %v1063_v42 = vsel %vm598_vm1, %v4079_v62, %v4078_v57  ;;  %v1075_v17 = vmul.f32 %v4078_v57, %v2976_v43  ;;  %v4081_v16 = vld [vmem:[#allocation28_spill] sm:$0xff]  ;;  %v1162_v57 = vsel %vm598_vm1, %v3377_v3, %v3383_v51 }
 0x231   : > { %v1813_v52 = vpop.permute.xlu0 %1812  ;;  %1912 = vrot.lane.b32.xlu0 %v1039_v7, %s2573_s10  ;;  %v1073_v7 = vmul.f32 0.0, %v4079_v62  ;;  %v1768_v25 = vadd.f32 %v1758_v46, %v1702_v55  ;;  %v1074_v10 = vmul.f32 %v1063_v42, %v2949_v39  ;;  %v4082_v62 = vld [vmem:[#allocation24_spill] sm:$0xff]  ;;  %v1136_v42 = vadd.f32 %v1126_v48, %v1071_v37 }
 0x232   : > { %v1815_v9 = vpop.permute.xlu1 %1814  ;;  %1918 = vrot.lane.b32.xlu1 %v1042_v22, %s2573_s10  ;;  %v1135_v22 = vadd.f32 %v1125_v24, %v1070_v18  ;;  %v1127_v34 = vsel %vm531_vm7, %v4082_v62, %v4081_v16  ;;  %v1137_v18 = vadd.f32 %v4080_v40, %v1072_v0  ;;  %v1233_v0 = vsel %vm665_vm2, %v3464_v36, %v3469_v8  ;;  %s2592_s10 = smov 64  }
 0x233   : > { %v1824_v50 = vsel %vm665_vm2, %v1813_v52, %v1815_v9  ;;  %v1703_v52 = vadd.f32 %v3509_v6, %v1637_v59  ;;  %v1138_v49 = vadd.f32 %v1127_v34, %v1073_v7  ;;  %v1171_v7 = vadd.f32 %v1162_v57, %v1136_v42 }
 0x234   : > { %v1170_v12 = vadd.f32 %v3377_v3, %v1135_v22  ;;  %v1834_v46 = vadd.f32 %v1824_v50, %v1768_v25  ;;  %v4083_v50 = vld [vmem:[#allocation29_spill] sm:$0xff]  ;;  %v1172_v37 = vadd.f32 %v3383_v51, %v1137_v18  ;;  %v1232_v3 = vsel %vm665_vm2, %v3458_v11, %v3464_v36 }
 0x235   : > { %v3655_v15 = vpop.permute.xlu0 %1816  ;;  %v1299_v8 = vsel %vm732_vm4, %v3590_v38, %v3599_v54  ;;  %v1243_v54 = vadd.f32 %v1232_v3, %v1171_v7  ;;  %v1234_v18 = vsel %vm665_vm2, %v3476_v14, %v3481_v44  ;;  %v1235_v42 = vsel %vm665_vm2, %v3481_v44, %v3485_v2 }
 0x236   : > { %v3657_v26 = vpop.permute.xlu1 %1818  ;;  %v1242_v6 = vadd.f32 %v3458_v11, %v1170_v12  ;;  %v1244_v51 = vadd.f32 %v1233_v0, %v1172_v37  ;;  %v1298_v11 = vsel %vm732_vm4, %v3581_v20, %v3590_v38  ;;  %v1140_v38 = vadd.f32 %v4083_v50, %v1075_v17 }
 0x237   : > { %v1639_v0 = vmul.f32 %v3408_v58, %v2949_v39  ;;  %v1301_v44 = vsel %vm732_vm4, %v3609_v41, %v3611_v61 }
 0x238   : > { %v1308_v40 = vadd.f32 %v3581_v20, %v1242_v6  ;;  %v1310_v12 = vadd.f32 %v1299_v8, %v1244_v51 }
 0x239   : > { %v3659_v29 = vpop.permute.xlu0 %1820  ;;  %v1705_v61 = vadd.f32 %v3517_v60, %v1639_v0 }
 0x23a   : > { %v3661_v19 = vpop.permute.xlu1 %1822 }
 0x23b   : > { %4073 = vst [vmem:[#allocation15_spill] sm:$0xff] %v3661_v19  ;;  %v1759_v19 = vsel %vm598_vm1, %v1749_v30, %v3621_v21  ;;  %v1825_v30 = vsel %vm665_vm2, %v1815_v9, %v3655_v15  ;;  %v1128_v9 = vsel %vm531_vm7, %v4081_v16, %v4083_v50 }
 0x23c   : > { %v1769_v45 = vadd.f32 %v1759_v19, %v1703_v52  ;;  %v1139_v16 = vadd.f32 %v1128_v9, %v1074_v10 }
 0x23d   : > { %v3663_v4 = vpop.permute.xlu0 %1946 }
 0x23e   : > { %v3665_v56 = vpop.permute.xlu1 %1948  ;;  %v1835_v19 = vadd.f32 %v1825_v30, %v1769_v45  ;;  %v1163_v45 = vsel %vm598_vm1, %v3388_v35, %v3391_v33  ;;  %v1968_v34 = vadd.f32 %v3663_v4, %v1308_v40  ;;  %v1309_v30 = vadd.f32 %v1298_v11, %v1243_v54  ;;  %v4084_v40 = vld [vmem:[#allocation30_spill] sm:$0xff] }
 0x23f   : > { %v1174_v10 = vadd.f32 %v1163_v45, %v1139_v16 }
 0x241   : > { %v1951_v1 = vpop.permute.xlu0 %1950  ;;  %v1246_v17 = vadd.f32 %v1234_v18, %v1174_v10 }
 0x242   : > { %v3667_v23 = vpop.permute.xlu1 %1952  ;;  %v1959_v52 = vsel %vm864_vm8, %v3665_v56, %v1951_v1  ;;  %v1629_v1 = vsel %vm1627_vm13, %v3408_v58, %v3415_v63 }
 0x243   : > { %v1640_v2 = vmul.f32 %v1629_v1, %v2976_v43 }
 0x245   : > { %v3684_v27 = vpop.permute.xlu0 %1954  ;;  %v1706_v8 = vadd.f32 %v4084_v40, %v1640_v2 }
 0x246   : > { %v3692_v53 = vpop.permute.xlu1 %1956 }
 0x249   : > { %v1879_v24 = vpop.permute.xlu0 %1878 }
 0x24a   : > { %v1881_v55 = vpop.permute.xlu1 %1880 }
 0x24b   : > { %v1890_v62 = vsel %vm732_vm4, %v1879_v24, %v1881_v55  ;;  %v1173_v24 = vadd.f32 %v3388_v35, %v1138_v49  ;;  %v1638_v49 = vmul.f32 0.0, %v3403_v47 }
 0x24c   : > { %v1900_v59 = vadd.f32 %v1890_v62, %v1834_v46  ;;  %v1958_v46 = vsel %vm864_vm8, %v3663_v4, %v3665_v56  ;;  %v1300_v4 = vsel %vm732_vm4, %v3604_v5, %v3609_v41  ;;  %v1970_v56 = vadd.f32 %v1959_v52, %v1310_v12 }
 0x24d   : > { %v3729_v22 = vpop.permute.xlu0 %1882  ;;  %v1245_v35 = vadd.f32 %v3476_v14, %v1173_v24  ;;  %v1969_v57 = vadd.f32 %v1958_v46, %v1309_v30  ;;  %v1175_v62 = vadd.f32 %v3391_v33, %v1140_v38  ;;  %v1960_v14 = vsel %vm864_vm8, %v3667_v23, %v3684_v27 }
 0x24e   : > { %v1891_v48 = vsel %vm732_vm4, %v1881_v55, %v3729_v22  ;;  %v3737_v25 = vpop.permute.xlu1 %1884  ;;  %2014 = vrot.lane.b32.xlu0 %v1900_v59, %s2592_s10  ;;  %v1704_v59 = vadd.f32 %v3500_v28, %v1638_v49  ;;  %v1312_v50 = vadd.f32 %v1300_v4, %v1246_v17  ;;  %v1760_v28 = vsel %vm598_vm1, %v3626_v13, %v3639_v32 }
 0x24f   : > { %v1901_v36 = vadd.f32 %v1891_v48, %v1835_v19  ;;  %v1311_v47 = vadd.f32 %v3604_v5, %v1245_v35  ;;  %v1247_v5 = vadd.f32 %v1235_v42, %v1175_v62  ;;  %v1961_v41 = vsel %vm864_vm8, %v3684_v27, %v3692_v53  ;;  %v4085_v48 = vld [vmem:[#allocation15_spill] sm:$0xff] }
 0x250   : > { %v1770_v58 = vadd.f32 %v3621_v21, %v1704_v59  ;;  %v1972_v3 = vadd.f32 %v1960_v14, %v1312_v50  ;;  %v1641_v21 = vmul.f32 0.0, %v3415_v63  ;;  %v1826_v27 = vsel %vm665_vm2, %v3657_v26, %v3659_v29 }
 0x251   : > { %2016 = vrot.lane.b32.xlu1 %v1901_v36, %s2592_s10  ;;  %v1887_v20 = vpop.permute.xlu0 %1886  ;;  %v1971_v9 = vadd.f32 %v3667_v23, %v1311_v47  ;;  %v1313_v19 = vadd.f32 %v1301_v44, %v1247_v5  ;;  %v1761_v23 = vsel %vm598_vm1, %v3639_v32, %v3644_v31  ;;  %v1771_v60 = vadd.f32 %v1760_v28, %v1705_v61  ;;  %v4086_v36 = vld [vmem:[#allocation14_spill] sm:$0xff] }
 0x252   : > { %v3758_v55 = vpop.permute.xlu1 %1888  ;;  %1980 = vrot.lane.b32.xlu0 %v1968_v34, %s2587_s21  ;;  %v1836_v13 = vadd.f32 %v3655_v15, %v1770_v58  ;;  %v1827_v32 = vsel %vm665_vm2, %v3659_v29, %v4085_v48  ;;  %v1772_v63 = vadd.f32 %v1761_v23, %v1706_v8  ;;  %v1892_v15 = vsel %vm732_vm4, %v3737_v25, %v1887_v20  ;;  %v4087_v34 = vld [vmem:[#allocation13_spill] sm:$0xff] }
 0x253   : > { %v1973_v45 = vadd.f32 %v1961_v41, %v1313_v19  ;;  %v1707_v16 = vadd.f32 %v4086_v36, %v1641_v21  ;;  %v1837_v26 = vadd.f32 %v1826_v27, %v1771_v60  ;;  %v1893_v54 = vsel %vm732_vm4, %v1887_v20, %v3758_v55 }
 0x254   : > { %v1902_v11 = vadd.f32 %v3729_v22, %v1836_v13  ;;  %v1838_v24 = vadd.f32 %v1827_v32, %v1772_v63  ;;  %v4088_v63 = vld [vmem:[#allocation12_spill] sm:$0xff] }
 0x255   : > { %1984 = vrot.lane.b32.xlu1 %v1970_v56, %s2587_s21  ;;  %v459_v6 = vpop.permute.xlu0 %458  ;;  %v1773_v22 = vadd.f32 %v3644_v31, %v1707_v16  ;;  %v1903_v12 = vadd.f32 %v1892_v15, %v1837_v26 }
 0x256   : > { %v461_v33 = vpop.permute.xlu1 %460  ;;  %1982 = vrot.lane.b32.xlu0 %v1969_v57, %s2587_s21  ;;  %v1904_v25 = vadd.f32 %v1893_v54, %v1838_v24  ;;  %v475_v4 = vmul.f32 0.0, %v459_v6 }
 0x257   : > { %v3788_v37 = vsel %vm466_vm14, %v459_v6, %v461_v33  ;;  %v477_v52 = vmul.f32 %v461_v33, %v4087_v34  ;;  %v1839_v38 = vadd.f32 %v4085_v48, %v1773_v22 }
 0x259   : > { %1986 = vrot.lane.b32.xlu1 %v1971_v9, %s2587_s21  ;;  %v463_v7 = vpop.permute.xlu0 %462  ;;  %v1905_v35 = vadd.f32 %v3758_v55, %v1839_v38 }
 0x25a   : > { %v465_v53 = vpop.permute.xlu1 %464  ;;  %1988 = vrot.lane.b32.xlu0 %v1972_v3, %s2587_s21  ;;  %v478_v1 = vmul.f32 0.0, %v463_v7 }
 0x25b   : > { %v468_v51 = vsel %vm466_vm14, %v463_v7, %v465_v53  ;;  %v480_v10 = vmul.f32 %v465_v53, %v2976_v43 }
 0x25c   : > { %v479_v30 = vmul.f32 %v468_v51, %v2949_v39 }
 0x25d   : > { %1990 = vrot.lane.b32.xlu1 %v1973_v45, %s2587_s21  ;;  %v522_v29 = vpop.permute.xlu0 %521  ;;  %s2461_s21 = scalar_lea.vmem %s3931_s25, 512 }
 0x25e   : > { %v524_v18 = vpop.permute.xlu1 %523  ;;  %2018 = vrot.lane.b32.xlu0 %v1902_v11, %s2592_s10  ;;  %v476_v11 = vmul.f32 %v3788_v37, %v4088_v63  ;;  %p2462_p6 = scmp.ne.s32.totalorder %s3931_s25, %s2461_s21 }
 0x25f   : > { %v3823_v46 = vadd.f32 %v524_v18, %v477_v52  ;;  %v533_v51 = vsel %vm531_vm7, %v522_v29, %v524_v18 }
 0x260   : > { %v543_v16 = vadd.f32 %v533_v51, %v476_v11  ;;  %p2463_p10 = pnand %p2462_p6, %p4089_p9 }
 0x261   : > { %2020 = vrot.lane.b32.xlu1 %v1903_v12, %s2592_s10  ;;  %v528_v20 = vpop.permute.xlu0 %527 }
 0x262   : > { %v530_v49 = vpop.permute.xlu1 %529  ;;  %2022 = vrot.lane.b32.xlu0 %v1904_v25, %s2592_s10  ;;  %p2464_p12 = pneg %p2463_p10 }
 0x263   : > { %v535_v31 = vsel %vm531_vm7, %v528_v20, %v530_v49  ;;  %v3832_v56 = vadd.f32 %v530_v49, %v480_v10 }
 0x264   : > { %v3834_v17 = vadd.f32 %v535_v31, %v479_v30 }
 0x265   : > { %2024 = vrot.lane.b32.xlu1 %v1905_v35, %s2592_s10  ;;  %v520_v43 = vpop.permute.xlu0 %519  ;;  %s3937_s10 = scalar_lea.hbm %s4019_s7, %s2337_s23 }
 0x266   : > { %v532_v42 = vsel %vm531_vm7, %v520_v43, %v522_v29  ;;  %v526_v57 = vpop.permute.xlu1 %525 }
 0x267   : > { %v542_v39 = vadd.f32 %v532_v42, %v475_v4  ;;  %v534_v62 = vsel %vm531_vm7, %v526_v57, %v528_v20  ;;  %vm2026_vm7 = vcmask 523264  }
 0x268   : > { %v545_v47 = vadd.f32 %v534_v62, %v478_v1 }
 0x269   : > { %v589_v14 = vpop.permute.xlu0 %588 }
 0x26a   : > { %v591_v55 = vpop.permute.xlu1 %590 }
 0x26b   : > { %v600_v15 = vsel %vm598_vm1, %v589_v14, %v591_v55  ;;  %v611_v37 = vadd.f32 %v591_v55, %v3823_v46 }
 0x26c   : > { %v610_v34 = vadd.f32 %v600_v15, %v543_v16 }
 0x26d   : > { %v595_v6 = vpop.permute.xlu0 %594 }
 0x26e   : > { %v3839_v0 = vpop.permute.xlu1 %596 }
 0x26f   : > { %v602_v20 = vsel %vm598_vm1, %v595_v6, %v3839_v0 }
 0x270   : > { %v613_v46 = vadd.f32 %v602_v20, %v3834_v17 }
 0x271   : > { %v587_v59 = vpop.permute.xlu0 %586 }
 0x272   : > { %v599_v50 = vsel %vm598_vm1, %v587_v59, %v589_v14  ;;  %v593_v44 = vpop.permute.xlu1 %592 }
 0x273   : > { %v609_v33 = vadd.f32 %v599_v50, %v542_v39  ;;  %v601_v2 = vsel %vm598_vm1, %v593_v44, %v595_v6  ;;  %v614_v50 = vadd.f32 %v3839_v0, %v3832_v56 }
 0x274   : > { %v3843_v5 = vadd.f32 %v601_v2, %v545_v47 }
 0x275   : > { %v656_v9 = vpop.permute.xlu0 %655 }
 0x276   : > { %v658_v58 = vpop.permute.xlu1 %657 }
 0x277   : > { %v667_v54 = vsel %vm665_vm2, %v656_v9, %v658_v58  ;;  %v678_v49 = vadd.f32 %v658_v58, %v611_v37 }
 0x278   : > { %v677_v22 = vadd.f32 %v667_v54, %v610_v34 }
 0x279   : > { %v662_v28 = vpop.permute.xlu0 %661 }
 0x27a   : > { %v3845_v3 = vpop.permute.xlu1 %663 }
 0x27b   : > { %v669_v4 = vsel %vm665_vm2, %v662_v28, %v3845_v3 }
 0x27c   : > { %v680_v14 = vadd.f32 %v669_v4, %v613_v46 }
 0x27d   : > { %v654_v41 = vpop.permute.xlu0 %653 }
 0x27e   : > { %v660_v61 = vpop.permute.xlu1 %659  ;;  %v666_v31 = vsel %vm665_vm2, %v654_v41, %v656_v9 }
 0x27f   : > { %v676_v55 = vadd.f32 %v666_v31, %v609_v33  ;;  %v668_v9 = vsel %vm665_vm2, %v660_v61, %v662_v28 }
 0x280   : > { %v679_v61 = vadd.f32 %v668_v9, %v3843_v5 }
 0x281   : > { %v723_v19 = vpop.permute.xlu0 %722 }
 0x282   : > { %v725_v23 = vpop.permute.xlu1 %724 }
 0x283   : > { %v734_v52 = vsel %vm732_vm4, %v723_v19, %v725_v23  ;;  %v745_v42 = vadd.f32 %v725_v23, %v678_v49  ;;  %v681_v23 = vadd.f32 %v3845_v3, %v614_v50 }
 0x284   : > { %v744_v29 = vadd.f32 %v734_v52, %v677_v22 }
 0x285   : > { %v3847_v7 = vpop.permute.xlu0 %728 }
 0x286   : > { %v3849_v21 = vpop.permute.xlu1 %730 }
 0x287   : > { %v736_v62 = vsel %vm732_vm4, %v3847_v7, %v3849_v21  ;;  %v748_v51 = vadd.f32 %v3849_v21, %v681_v23 }
 0x288   : > { %v747_v58 = vadd.f32 %v736_v62, %v680_v14 }
 0x289   : > { %v721_v40 = vpop.permute.xlu0 %720 }
 0x28a   : > { %v727_v8 = vpop.permute.xlu1 %726  ;;  %v733_v47 = vsel %vm732_vm4, %v721_v40, %v723_v19 }
 0x28b   : > { %v743_v41 = vadd.f32 %v733_v47, %v676_v55 }
 0x28d   : > { %v1915_v13 = vpop.permute.xlu0 %1914 }
 0x28e   : > { %v1917_v27 = vpop.permute.xlu1 %1916 }
 0x28f   : > { %v1925_v25 = vsel %vm864_vm8, %v1915_v13, %v1917_v27  ;;  %v1936_v6 = vadd.f32 %v1917_v27, %v745_v42  ;;  %v2061_v42 = vld [vmem:[%s4017_s5] sm:$0xff] }
 0x290   : > { %v1935_v38 = vadd.f32 %v1925_v25, %v744_v29 }
 0x291   : > { %v3851_v53 = vpop.permute.xlu0 %1920 }
 0x292   : > { %v3853_v60 = vpop.permute.xlu1 %1922 }
 0x293   : > { %v1927_v17 = vsel %vm864_vm8, %v3851_v53, %v3853_v60  ;;  %v1939_v52 = vadd.f32 %v3853_v60, %v748_v51 }
 0x294   : > { %v1938_v27 = vadd.f32 %v1927_v17, %v747_v58 }
 0x2a2   : > { %v3855_v48 = vpop.permute.xlu0 %2047 }
 0x2a3   : > { %v3857_v32 = vpop.permute.xlu1 %2052 }
 0x2a6   : > { %v1913_v45 = vpop.permute.xlu0 %1912 }
 0x2a7   : > { %v1919_v36 = vpop.permute.xlu1 %1918  ;;  %v1924_v44 = vsel %vm864_vm8, %v1913_v45, %v1915_v13  ;;  %v735_v13 = vsel %vm732_vm4, %v727_v8, %v3847_v7 }
 0x2a8   : > { %v1934_v45 = vadd.f32 %v1924_v44, %v743_v41  ;;  %v1926_v3 = vsel %vm864_vm8, %v1919_v36, %v3851_v53  ;;  %v746_v34 = vadd.f32 %v735_v13, %v679_v61 }
 0x2aa   : > { %v1937_v5 = vadd.f32 %v1926_v3, %v746_v34 }
 0x2c0   : > { %v3863_v26 = vpop.permute.xlu0 %2014 }
 0x2c3   : > { %v2017_v24 = vpop.permute.xlu1 %2016 }
 0x2c4   : > { %v1981_v12 = vpop.permute.xlu0 %1980  ;;  %v2027_v1 = vsel %vm2026_vm7, %v3863_v26, %v2017_v24 }
 0x2c7   : > { %v1985_v18 = vpop.permute.xlu1 %1984 }
 0x2c8   : > { %v1983_v10 = vpop.permute.xlu0 %1982  ;;  %v2004_v19 = vadd.f32 %v1985_v18, %v1936_v6 }
 0x2c9   : > { %v1993_v30 = vsel %vm565_vm9, %v1983_v10, %v1985_v18  ;;  %v1992_v40 = vsel %vm565_vm9, %v1981_v12, %v1983_v10 }
 0x2ca   : > { %v2003_v35 = vadd.f32 %v1993_v30, %v1935_v38  ;;  %v2002_v11 = vadd.f32 %v1992_v40, %v1934_v45 }
 0x2cb   : > { %v1987_v43 = vpop.permute.xlu1 %1986 }
 0x2cc   : > { %v2038_v57 = vadd.f32 %v2027_v1, %v2003_v35  ;;  %v1989_v39 = vpop.permute.xlu0 %1988  ;;  %v2037_v53 = vadd.f32 %v3863_v26, %v2002_v11  ;;  %v2062_v26 = vld [vmem:[%s4018_s6] sm:$0xff] }
 0x2cd   : > { %v1994_v8 = vsel %vm565_vm9, %v1987_v43, %v1989_v39 }
 0x2ce   : > { %v2056_v59 = vadd.f32 %v3855_v48, %v2038_v57  ;;  %v2005_v25 = vadd.f32 %v1994_v8, %v1937_v5  ;;  %v2055_v37 = vadd.f32 %v3855_v48, %v2037_v53 }
 0x2cf   : > { %v1991_v2 = vpop.permute.xlu1 %1990 }
 0x2d0   : > { %2076 = vrot.lane.b32.xlu0 %v2056_v59, %s2584_s12  ;;  %v2019_v33 = vpop.permute.xlu0 %2018  ;;  %v1995_v56 = vsel %vm565_vm9, %v1989_v39, %v1991_v2  ;;  %v2007_v21 = vadd.f32 %v1991_v2, %v1939_v52 }
 0x2d1   : > { %v2028_v0 = vsel %vm2026_vm7, %v2017_v24, %v2019_v33  ;;  %v2006_v15 = vadd.f32 %v1995_v56, %v1938_v27 }
 0x2d2   : > { %v2039_v28 = vadd.f32 %v2028_v0, %v2004_v19 }
 0x2d3   : > { %v2021_v63 = vpop.permute.xlu1 %2020 }
 0x2d4   : > { %v2057_v16 = vadd.f32 %v3855_v48, %v2039_v28  ;;  %v2023_v54 = vpop.permute.xlu0 %2022  ;;  %v2040_v60 = vadd.f32 %v2021_v63, %v2005_v25 }
 0x2d5   : > { %v2029_v7 = vsel %vm2026_vm7, %v2021_v63, %v2023_v54 }
 0x2d6   : > { %v2041_v24 = vadd.f32 %v2029_v7, %v2006_v15  ;;  %2078 = vrot.lane.b32.xlu1 %v2057_v16, %s2584_s12  ;;  %v2058_v38 = vadd.f32 %v3857_v32, %v2040_v60 }
 0x2d7   : > { %v2025_v22 = vpop.permute.xlu1 %2024 }
 0x2d8   : > { %v2059_v36 = vadd.f32 %v3857_v32, %v2041_v24  ;;  %v2030_v12 = vsel %vm2026_vm7, %v2023_v54, %v2025_v22 }
 0x2d9   : > { %v2042_v29 = vadd.f32 %v2030_v12, %v2007_v21 }
 0x2da   : > { %2082 = vrot.lane.b32.xlu0 %v2059_v36, %s2584_s12 }
 0x2db   : > { %v2060_v18 = vadd.f32 %v3857_v32, %v2042_v29 }
 0x2dd   : > { %2084 = vrot.lane.b32.xlu1 %v2060_v18, %s2584_s12 }
 0x2de   : > { %2074 = vrot.lane.b32.xlu0 %v2055_v37, %s2584_s12 }
 0x2e1   : > { %2080 = vrot.lane.b32.xlu1 %v2058_v38, %s2584_s12  ;;  %s2465_s12 = sshll.u32 %s2593_s20, 4  ;;  %s2466_s12 = int_to_ptr.vmem [resolvable:$false] %s2465_s12 }
 0x2e2   : > { %2065 = vperm.xlu0 %2430, %v2062_v26   ;;  %p2468_p2 = scmp.lt.s32.totalorder %s3931_s25, %s2466_s12 }
 0x342   : > { %v2077_v10 = vpop.permute.xlu0 %2076 }
 0x348   : > { %v2079_v20 = vpop.permute.xlu1 %2078 }
 0x349   : > { %v2087_v48 = vsel %vm1857_vm5, %v2077_v10, %v2079_v20 }
 0x34a   : > { %2169 = vst [vmem:[%s317_s26 + $0x8] sm:$0xff] %v2087_v48 }
 0x34c   : > { %v2083_v30 = vpop.permute.xlu0 %2082 }
 0x34f   : > { %v2085_v49 = vpop.permute.xlu1 %2084 }
 0x350   : > { %v2075_v32 = vpop.permute.xlu0 %2074  ;;  %v2089_v35 = vsel %vm1857_vm5, %v2083_v30, %v2085_v49 }
 0x351   : > { %v2086_v4 = vsel %vm1857_vm5, %v2075_v32, %v2077_v10  ;;  %v2339_v31 = vpack.c.bf16 %v2089_v35, %v2087_v48  ;;  %2171 = vst [vmem:[%s317_s26 + $0x18] sm:$0xff] %v2089_v35 }
 0x352   : > { %2168 = vst [vmem:[%s317_s26] sm:$0xff] %v2086_v4 }
 0x353   : > { %v2081_v1 = vpop.permute.xlu1 %2080  ;;  %2340 = vmatprep.subr.bf16.mxu1 %v2339_v31 }
 0x354   : > { %v2088_v43 = vsel %vm1857_vm5, %v2081_v1, %v2083_v30 }
 0x355   : > { %2170 = vst [vmem:[%s317_s26 + $0x10] sm:$0xff] %v2088_v43  ;;  %v2341_v46 = vpack.c.bf16 %v2088_v43, %v2086_v4  ;;  %s2467_s26 = scalar_lea.vmem %s2466_s12, 1024 }
 0x356   : > { %p2469_p3 = scmp.lt.s32.totalorder %s2467_s26, %s2461_s21 }
 0x357   : > { %2342 = vmatpush1.bf16.msra.mxu1 %v2341_v46 }
 0x358   : > { %p2470_p4 = por %p2469_p3, %p2468_p2 }
 0x35a   : > { %2327 = vmatmul.mubr.msk.f32.vlgmr.msra.gmra.mrb[0].mxu1 %vm1429_vm3, %v2061_v42  ;;  %p2471_p7 = pnand %p2470_p4, %p2464_p12 }
 0x35c   : > { %2474 = shalt.err (!%p2471_p7)
}
 0x35d   : > { %s2475_s13 = scalar_lea.hbm %s3937_s10, 512  ;;  %s2479_s24 = scalar_lea.hbm %s4019_s7, 1024 }
 0x35e   : > { %p2476_p8 = scmp.ne.s32.totalorder %s3937_s10, %s2475_s13  ;;  %p2480_p1 = scmp.lt.u32.totalorder %s3937_s10, %s4019_s7 }
 0x35f   : > { %p2481_p0 = scmp.lt.u32.totalorder %s2479_s24, %s2475_s13  ;;  %p2483_p6 = scmp.lt.u32.totalorder %s2475_s13, %s3937_s10 }
 0x360   : > { %p2477_p11 = pnand %p2476_p8, %p4089_p9 }
 0x361   : > { %p2482_p5 = por %p2481_p0, %p2480_p1 }
 0x362   : > { %p2478_p13 = pneg %p2477_p11 }
 0x363   : > { %p2484_p10 = por %p2483_p6, %p2482_p5 }
 0x365   : > { %p2485_p12 = pnand %p2484_p10, %p2478_p13 }
 0x367   : > { %2488 = shalt.err (!%p2485_p12)
}
 0x368   : > { %s2594_s21 = smov 256   ;;  %s2320_s26 = sshll.u32 %s3920_s22, 4  ;;  %v2066_v57 = vpop.permute.xlu0 %2065 }
 0x369   : > { %2347 = dma.vmem_to_hbm [thread:$0]  (%p4089_p9), %s3931_s25, 512, %s3937_s10, %s2175_s18, %s2594_s21, %s2594_s21, %s2567_s19  }
 0x36a   : > { %s2338_s23 = sshll.u32 %s2662_s9, 8  ;;  %s324_s17 = scalar_lea.vmem [#allocation7], %s2320_s26 }
 0x36b   : > { %s2210_s13 = sshll.u32 %s324_s17, 4  ;;  %s3969_s12 = scalar_lea.hbm %s4020_s8, %s2338_s23  ;;  %s3971_s13 = int_to_ptr.vmem [resolvable:$true] %s2210_s13 }
 0x36c   : > { %s2180_s9 = scalar_lea.sflag [#allocation8], %s3920_s22  ;;  %s2489_s19 = scalar_lea.vmem %s3971_s13, 256 }
 0x36d   : > { %p2490_p2 = scmp.ne.s32.totalorder %s3971_s13, %s2489_s19  ;;  %s2595_s25 = smov [#allocation7]  }
 0x36e   : > { %s2493_s10 = sshll.u32 %s2595_s25, 4  ;;  %s2494_s10 = int_to_ptr.vmem [resolvable:$false] %s2493_s10 }
 0x36f   : > { %p2491_p3 = pnand %p2490_p2, %p4089_p9  ;;  %s2495_s18 = scalar_lea.vmem %s2494_s10, 512 }
 0x370   : > { %p2496_p7 = scmp.lt.s32.totalorder %s3971_s13, %s2494_s10  ;;  %p2497_p8 = scmp.lt.s32.totalorder %s2495_s18, %s2489_s19 }
 0x371   : > { %p2492_p4 = pneg %p2491_p3 }
 0x372   : > { %p2498_p11 = por %p2497_p8, %p2496_p7 }
 0x374   : > { %p2499_p13 = pnand %p2498_p11, %p2492_p4 }
 0x42d   : > { %v2163_v39 = vpop.f32.mrb[0].mxu1 }
 0x42e   : > { %v2164_v62 = vadd.f32 %v2163_v39, %v2066_v57  ;;  %v2165_v47 = vpop.f32.mrb[1].mxu1 }
 0x42f   : > { %v2166_v14 = vadd.f32 %v2165_v47, %v2066_v57 }
 0x430   : > { %2172 = vst [vmem:[%s324_s17] sm:$0xff] %v2164_v62 }
 0x431   : > { %2173 = vst [vmem:[%s324_s17 + $0x8] sm:$0xff] %v2166_v14 }
 0x432   : > { %2502 = shalt.err (!%p2499_p13)
}
 0x433   : > { %s2503_s22 = scalar_lea.hbm %s3969_s12, 256  ;;  %s2507_s23 = scalar_lea.hbm %s4020_s8, 512 }
 0x434   : > { %p2504_p1 = scmp.ne.s32.totalorder %s3969_s12, %s2503_s22  ;;  %p2508_p6 = scmp.lt.u32.totalorder %s3969_s12, %s4020_s8 }
 0x435   : > { %p2509_p10 = scmp.lt.u32.totalorder %s2507_s23, %s2503_s22  ;;  %p2511_p2 = scmp.lt.u32.totalorder %s2503_s22, %s3969_s12 }
 0x436   : > { %p2505_p0 = pnand %p2504_p1, %p4089_p9 }
 0x437   : > { %p2510_p12 = por %p2509_p10, %p2508_p6 }
 0x438   : > { %p2506_p5 = pneg %p2505_p0 }
 0x439   : > { %p2512_p3 = por %p2511_p2, %p2510_p12 }
 0x43b   : > { %p2513_p4 = pnand %p2512_p3, %p2506_p5 }
 0x43d   : > { %2516 = shalt.err (!%p2513_p4)
}
 0x43e   : > { %2348 = dma.vmem_to_hbm [thread:$0]  (%p4089_p9), %s3971_s13, 256, %s3969_s12, %s2180_s9  }
 0x43f PF: > { %p2364_p7 = scmp.ge.s32.totalorder %s2559_s30, 2  ;;  %s2222_s20 = sand.u32 1, %s2547_s27  }
 0x440   : > { %p4090_p8 = scmp.ne.s32.totalorder %s4041_s16, 0  ;;  %s2223_s19 = scalar_lea.sflag [#allocation5], %s2222_s20 }
 0x442   : > { %p2356_p11 = pnand %p2364_p7, %p4090_p8 }
 0x444   : > { %2538 = dma.done.wait (!%p2356_p11), %s2223_s19, 512  }
 0x445   : > { %2540 = vsyncadd (!%p2356_p11), %s2223_s19, 4294966784  ;;  %s2232_s25 = scalar_lea.sflag [#allocation8], %s2222_s20 }
 0x446   : > { %2542 = dma.done.wait (!%p2356_p11), %s2232_s25, 256  }
 0x447   : > { %2544 = vsyncadd (!%p2356_p11), %s2232_s25, 4294967040  ;;  %p23_p9 = scmp.ge.s32.totalorder %s2666_s11, 4   ;;  %s4091_s27 = smov %s2551_s28 }
 0x448   : > { %s4092_s28 = smov %s2555_s29  ;;  %s4093_s29 = smov %s2677_s14 }
 0x449   : > { %s4094_s30 = smov %s2666_s11  ;;  %25 = sbr.rel (!%p23_p9) target bundleno = 6 (0x6), region = 129 }
 0x450   :  { %2237 = vsyncpa [#allocation4], 1 }
 0x451   :  { %2239 = vsyncpa [#allocation4 + $0x1], 1 }
 0x452   :  { %2240 = vsyncpa [#allocation5], 1 }
 0x453   :  { %2242 = vsyncpa [#allocation5 + $0x1], 1 }
 0x454   :  { %2243 = vsyncpa [#allocation8], 1 }
 0x455   :  { %2245 = vsyncpa [#allocation8 + $0x1], 1 }

</bundles_post_ra>
